<compile_context>
chip_gen: v7x
topology: tpu7x:2x2x1
jax: 0.10.0
libtpu: 0.0.40
codegen_flags: <defaults>
</compile_context>

<pallas_src>
import functools

import jax
import jax.numpy as jnp
from jax.experimental import pallas as pl
from jax.experimental.pallas import tpu as pltpu


def _round_up(n, m):
    return ((n + m - 1) // m) * m


def _if_step(v, pre, threshold, soft_reset):
    """One IFNode update (charge -> fire -> reset). Returns (spike, new_v), all f32."""
    v = v + pre
    fired = v >= threshold
    spike = fired.astype(jnp.float32)
    if soft_reset:
        v = v - spike * threshold            # v_reset = None (soft / residual reset)
    else:
        v = jnp.where(fired, 0.0, v)         # v_reset = 0.0 (hard reset), single select
    return spike, v


def tp_kernel(x_ref, we_ref, be_ref, wh_ref, bh_ref, wo_ref, bo_ref, o_ref, *,
              threshold, soft_reset, num_steps, unroll):
    _, TB, _ = x_ref.shape                    # (T, TB, 1)
    Hp = we_ref.shape[1]
    H2p = wh_ref.shape[1]
    Cp = wo_ref.shape[1]

    # Hoist loop-invariant broadcasts out of the recurrence (JAX does not CSE
    # broadcast_in_dim; per-iteration re-broadcast would cost T copies).
    we_b = jnp.broadcast_to(we_ref[...], (TB, Hp))
    be_b = jnp.broadcast_to(be_ref[...], (TB, Hp))
    bh_b = jnp.broadcast_to(bh_ref[...], (TB, H2p))
    bo_b = jnp.broadcast_to(bo_ref[...], (TB, Cp))

    def body(t, carry):
        v1, v2, v3, acc = carry

        # Frozen, stateless encoder Linear(1, H) done in-kernel:
        # pre1[b, h] = x[b, t] * we[h] + be[h]  (one VPU broadcast-FMA, hidden under MXU).
        x_t = x_ref[t]                                         # (TB, 1) f32
        s1, v1 = _if_step(v1, x_t * we_b + be_b, threshold, soft_reset)

        # hidden: Linear(H, H2) + IFNode. Spikes are exactly {0,1} -> bf16 cast lossless.
        pre2 = jnp.dot(s1.astype(jnp.bfloat16), wh_ref[...],
                       preferred_element_type=jnp.float32) + bh_b
        s2, v2 = _if_step(v2, pre2, threshold, soft_reset)

        # output: Linear(H2, C) + IFNode.
        pre3 = jnp.dot(s2.astype(jnp.bfloat16), wo_ref[...],
                       preferred_element_type=jnp.float32) + bo_b
        s3, v3 = _if_step(v3, pre3, threshold, soft_reset)

        return v1, v2, v3, acc + s3

    init = (jnp.zeros((TB, Hp), jnp.float32),      # v1 (encoder membrane)
            jnp.zeros((TB, H2p), jnp.float32),     # v2 (hidden membrane)
            jnp.zeros((TB, Cp), jnp.float32),      # v3 (output membrane)
            jnp.zeros((TB, Cp), jnp.float32))      # spike accumulator
    _, _, _, acc = jax.lax.fori_loop(0, num_steps, body, init, unroll=unroll)

    # Rate-coded readout: mean over timesteps (pre-multiplied reciprocal, no divide).
    o_ref[...] = acc * jnp.float32(1.0 / num_steps)


def prepare_params(params, hidden_size, hidden_size_2, num_classes):
    """Pad to vreg tiles and cast matmul weights to bf16 ONCE (hoisted out of forward)."""
    we, be, wh, bh, wo, bo = params            # (1,H) (1,H) (H,H2) (1,H2) (H2,C) (1,C)
    Hp = _round_up(hidden_size, 128)
    H2p = _round_up(hidden_size_2, 128)
    Cp = _round_up(num_classes, 128)

    # Zero padding is inert: padded encoder lanes produce 0 pre-activation, and the
    # padded rows of wh_p / wo_p are zero, so any padded-lane spikes contribute nothing.
    we_p = jnp.pad(we.astype(jnp.float32), ((0, 0), (0, Hp - hidden_size)))
    be_p = jnp.pad(be.astype(jnp.float32), ((0, 0), (0, Hp - hidden_size)))
    wh_p = jnp.pad(wh.astype(jnp.float32),
                   ((0, Hp - hidden_size), (0, H2p - hidden_size_2))).astype(jnp.bfloat16)
    bh_p = jnp.pad(bh.astype(jnp.float32), ((0, 0), (0, H2p - hidden_size_2)))
    wo_p = jnp.pad(wo.astype(jnp.float32),
                   ((0, H2p - hidden_size_2), (0, Cp - num_classes))).astype(jnp.bfloat16)
    bo_p = jnp.pad(bo.astype(jnp.float32), ((0, 0), (0, Cp - num_classes)))
    return (we_p, be_p, wh_p, bh_p, wo_p, bo_p)


def tp_forward(x, padded_params, *, num_classes, threshold=1.0,
               reset_value_residual=False):
    """x: (B, T) float32, matching the PyTorch forward's (batch, timesteps) convention."""
    B, T = x.shape
    we_p, be_p, wh_p, bh_p, wo_p, bo_p = padded_params
    Hp, H2p, Cp = we_p.shape[1], wh_p.shape[1], wo_p.shape[1]

    if T == 0:
        # TODO(synk): PyTorch reference would produce 0/0 = NaN here; we return zeros.
        return jnp.zeros((B, num_classes), jnp.float32)

    # Batch tiling: 8-sublane padding; cap the per-core tile at 64 sublanes so the four
    # recurrence carries stay well inside the 64-vreg file, and shard tiles across
    # TensorCores (v7x has 2) with a "parallel" grid axis.
    TB_CAP = 64
    Bp = _round_up(B, 8)
    if Bp <= TB_CAP:
        TB = Bp
    else:
        TB = TB_CAP
        Bp = _round_up(Bp, TB)
    n_tiles = Bp // TB

    # Tiny time-major input: (T, Bp, 1). The encoder pre-activation itself is computed
    # inside the kernel, so nothing O(T*B*H) ever touches HBM or VMEM.
    x_tm = jnp.transpose(x).astype(jnp.float32)                # (T, B)
    x_p = jnp.pad(x_tm, ((0, 0), (0, Bp - B)))[:, :, None]     # (T, Bp, 1)

    # Full unroll at toy sizes; cap code size / vreg live ranges when T or TB grow.
    unroll = True if (T <= 32 and TB <= 32) else 8

    kernel = functools.partial(
        tp_kernel,
        threshold=float(threshold),
        soft_reset=bool(reset_value_residual),
        num_steps=T,
        unroll=unroll,
    )

    # Advisory cost hint: the kernel hides a T-step recurrence behind a tiny I/O footprint.
    flops = 2 * T * Bp * (Hp * H2p + H2p * Cp)
    bytes_accessed = ((x_p.size + we_p.size + be_p.size + bh_p.size + bo_p.size
                       + Bp * Cp) * 4 + (wh_p.size + wo_p.size) * 2)
    cost = pl.CostEstimate(flops=flops, transcendentals=0,
                           bytes_accessed=bytes_accessed)

    out_padded = pl.pallas_call(
        kernel,
        out_shape=jax.ShapeDtypeStruct((Bp, Cp), jnp.float32),
        grid=(n_tiles,),
        in_specs=[
            pl.BlockSpec((T, TB, 1), lambda i: (0, i, 0)),     # x (time-major)
            pl.BlockSpec((1, Hp), lambda i: (0, 0)),           # encoder weight row
            pl.BlockSpec((1, Hp), lambda i: (0, 0)),           # encoder bias
            pl.BlockSpec((Hp, H2p), lambda i: (0, 0)),         # hidden weight (bf16)
            pl.BlockSpec((1, H2p), lambda i: (0, 0)),          # hidden bias
            pl.BlockSpec((H2p, Cp), lambda i: (0, 0)),         # output weight (bf16)
            pl.BlockSpec((1, Cp), lambda i: (0, 0)),           # output bias
        ],
        out_specs=pl.BlockSpec((TB, Cp), lambda i: (i, 0)),
        compiler_params=pltpu.CompilerParams(
            dimension_semantics=("parallel",)),
        cost_estimate=cost,
    )(x_p, we_p, be_p, wh_p, bh_p, wo_p, bo_p)

    return out_padded[:B, :num_classes]


def tp_reference(x, padded_params, num_classes, *, threshold, reset_value_residual):
    """Pure-JAX reference with identical numerics (bf16 matmul operands, f32 IF state)."""
    we_p, be_p, wh_p, bh_p, wo_p, bo_p = padded_params
    B, T = x.shape
    xf = x.astype(jnp.float32)
    v1 = jnp.zeros((B, we_p.shape[1]), jnp.float32)
    v2 = jnp.zeros((B, wh_p.shape[1]), jnp.float32)
    v3 = jnp.zeros((B, wo_p.shape[1]), jnp.float32)
    acc = jnp.zeros((B, wo_p.shape[1]), jnp.float32)
    for t in range(T):
        pre1 = xf[:, t:t + 1] * we_p + be_p
        s1, v1 = _if_step(v1, pre1, threshold, reset_value_residual)
        pre2 = jnp.dot(s1.astype(jnp.bfloat16), wh_p,
                       preferred_element_type=jnp.float32) + bh_p
        s2, v2 = _if_step(v2, pre2, threshold, reset_value_residual)
        pre3 = jnp.dot(s2.astype(jnp.bfloat16), wo_p,
                       preferred_element_type=jnp.float32) + bo_p
        s3, v3 = _if_step(v3, pre3, threshold, reset_value_residual)
        acc = acc + s3
    return (acc / T)[:, :num_classes]


def init_params(key, hidden_size, hidden_size_2, num_classes,
                encoder_min, encoder_max):
    """Parameter init matching the module's __init__ (bias_option=True).

    Convention here is (in_features, out_features) with y = x @ W + b; PyTorch stores
    (out, in) — transpose when importing trained PyTorch weights.
    """
    we = jnp.linspace(encoder_min, encoder_max, hidden_size,
                      dtype=jnp.float32).reshape(1, hidden_size)      # frozen linspace
    be = jnp.zeros((1, hidden_size), jnp.float32)                     # filled with 0.0

    k1, k2, k3, k4 = jax.random.split(key, 4)
    bound_h = 1.0 / float(hidden_size) ** 0.5
    wh = jax.random.uniform(k1, (hidden_size, hidden_size_2), jnp.float32,
                            -bound_h, bound_h)
    bh = jax.random.uniform(k2, (1, hidden_size_2), jnp.float32,
                            -bound_h, bound_h)
    bound_o = 1.0 / float(hidden_size_2) ** 0.5
    wo = jax.random.uniform(k3, (hidden_size_2, num_classes), jnp.float32,
                            -bound_o, bound_o)
    bo = jax.random.uniform(k4, (1, num_classes), jnp.float32,
                            -bound_o, bound_o)
    return (we, be, wh, bh, wo, bo)


if __name__ == "__main__":
    # Small shapes consistent with the forward: x is (batch, timesteps).
    B, T = 4, 8
    hidden_size, hidden_size_2, num_classes = 32, 32, 8
    threshold_value = 1.0
    reset_value_residual = False        # -> v_reset = 0.0 (hard reset)
    encoder_min, encoder_max = 0.1, 2.0

    key = jax.random.PRNGKey(0)
    kx, kp = jax.random.split(key)
    x = jax.random.uniform(kx, (B, T), jnp.float32, 0.0, 2.0)

    params = init_params(kp, hidden_size, hidden_size_2, num_classes,
                         encoder_min, encoder_max)
    padded_params = prepare_params(params, hidden_size, hidden_size_2, num_classes)

    fwd = jax.jit(functools.partial(
        tp_forward, num_classes=num_classes, threshold=threshold_value,
        reset_value_residual=reset_value_residual))
    out = jax.block_until_ready(fwd(x, padded_params))
    assert out.shape == (B, num_classes)

    ref = tp_reference(x, padded_params, num_classes,
                       threshold=threshold_value,
                       reset_value_residual=reset_value_residual)
    assert jnp.allclose(out, ref, atol=5e-3, rtol=5e-3), (out, ref)

    # TODO(synk): ATan surrogate gradient only affects backward; forward uses exact heaviside.
    print("KERNEL_OK")
</pallas_src>

<mosaic_0001>
module attributes {stable_mosaic.version = 11 : i64} {
  func.func @tp_kernel(%arg0: i32, %arg1: memref<8x8x1xf32, #tpu.memory_space<vmem>>, %arg2: memref<1x128xf32, #tpu.memory_space<vmem>>, %arg3: memref<1x128xf32, #tpu.memory_space<vmem>>, %arg4: memref<128x128xbf16, #tpu.memory_space<vmem>>, %arg5: memref<1x128xf32, #tpu.memory_space<vmem>>, %arg6: memref<128x128xbf16, #tpu.memory_space<vmem>>, %arg7: memref<1x128xf32, #tpu.memory_space<vmem>>, %arg8: memref<8x128xf32, #tpu.memory_space<vmem>>) attributes {dimension_semantics = [#tpu.dimension_semantics<parallel>], iteration_bounds = array<i64: 1>, scalar_prefetch = 0 : i64, scratch_operands = 0 : i64, tpu.core_type = #tpu.core_type<tc>, window_params = [{transform_indices = @transform_0, window_bounds = array<i64: 8, 8, 1>}, {pipeline_mode = #tpu.pipeline_mode<synchronous>, transform_indices = @transform_1, window_bounds = array<i64: 1, 128>}, {pipeline_mode = #tpu.pipeline_mode<synchronous>, transform_indices = @transform_2, window_bounds = array<i64: 1, 128>}, {pipeline_mode = #tpu.pipeline_mode<synchronous>, transform_indices = @transform_3, window_bounds = array<i64: 128, 128>}, {pipeline_mode = #tpu.pipeline_mode<synchronous>, transform_indices = @transform_4, window_bounds = array<i64: 1, 128>}, {pipeline_mode = #tpu.pipeline_mode<synchronous>, transform_indices = @transform_5, window_bounds = array<i64: 128, 128>}, {pipeline_mode = #tpu.pipeline_mode<synchronous>, transform_indices = @transform_6, window_bounds = array<i64: 1, 128>}, {transform_indices = @transform_7, window_bounds = array<i64: 8, 128>}]} {
    %c0 = arith.constant 0 : index
    %c0_0 = arith.constant 0 : index
    %0 = vector.load %arg2[%c0, %c0_0] : memref<1x128xf32, #tpu.memory_space<vmem>>, vector<1x128xf32>
    %1 = vector.shape_cast %0 : vector<1x128xf32> to vector<1x128xf32>
    %2 = vector.broadcast %1 : vector<1x128xf32> to vector<8x128xf32>
    %c0_1 = arith.constant 0 : index
    %c0_2 = arith.constant 0 : index
    %3 = vector.load %arg3[%c0_1, %c0_2] : memref<1x128xf32, #tpu.memory_space<vmem>>, vector<1x128xf32>
    %4 = vector.shape_cast %3 : vector<1x128xf32> to vector<1x128xf32>
    %5 = vector.broadcast %4 : vector<1x128xf32> to vector<8x128xf32>
    %c0_3 = arith.constant 0 : index
    %c0_4 = arith.constant 0 : index
    %6 = vector.load %arg5[%c0_3, %c0_4] : memref<1x128xf32, #tpu.memory_space<vmem>>, vector<1x128xf32>
    %7 = vector.shape_cast %6 : vector<1x128xf32> to vector<1x128xf32>
    %8 = vector.broadcast %7 : vector<1x128xf32> to vector<8x128xf32>
    %c0_5 = arith.constant 0 : index
    %c0_6 = arith.constant 0 : index
    %9 = vector.load %arg7[%c0_5, %c0_6] : memref<1x128xf32, #tpu.memory_space<vmem>>, vector<1x128xf32>
    %10 = vector.shape_cast %9 : vector<1x128xf32> to vector<1x128xf32>
    %11 = vector.broadcast %10 : vector<1x128xf32> to vector<8x128xf32>
    %cst = arith.constant 0.000000e+00 : f32
    %12 = vector.broadcast %cst : f32 to vector<8x128xf32>
    %cst_7 = arith.constant 0.000000e+00 : f32
    %13 = vector.broadcast %cst_7 : f32 to vector<8x128xf32>
    %cst_8 = arith.constant 0.000000e+00 : f32
    %14 = vector.broadcast %cst_8 : f32 to vector<8x128xf32>
    %cst_9 = arith.constant 0.000000e+00 : f32
    %15 = vector.broadcast %cst_9 : f32 to vector<8x128xf32>
    %c0_i32 = arith.constant 0 : i32
    %16 = arith.index_cast %c0_i32 : i32 to index
    %c0_10 = arith.constant 0 : index
    %c0_11 = arith.constant 0 : index
    %17 = vector.load %arg1[%16, %c0_10, %c0_11] : memref<8x8x1xf32, #tpu.memory_space<vmem>>, vector<1x8x1xf32>
    %18 = vector.shape_cast %17 : vector<1x8x1xf32> to vector<8x1xf32>
    %19 = vector.broadcast %18 : vector<8x1xf32> to vector<8x128xf32>
    %20 = arith.mulf %19, %2 : vector<8x128xf32>
    %21 = arith.addf %20, %5 : vector<8x128xf32>
    %22 = arith.addf %12, %21 : vector<8x128xf32>
    %cst_12 = arith.constant 1.000000e+00 : f32
    %23 = vector.broadcast %cst_12 : f32 to vector<8x128xf32>
    %24 = arith.cmpf oge, %22, %23 : vector<8x128xf32>
    %25 = arith.extui %24 : vector<8x128xi1> to vector<8x128xi32>
    %26 = arith.sitofp %25 : vector<8x128xi32> to vector<8x128xf32>
    %cst_13 = arith.constant 0.000000e+00 : f32
    %27 = vector.broadcast %cst_13 : f32 to vector<8x128xf32>
    %28 = arith.select %24, %27, %22 : vector<8x128xi1>, vector<8x128xf32>
    %29 = arith.truncf %26 : vector<8x128xf32> to vector<8x128xbf16>
    %c0_14 = arith.constant 0 : index
    %c0_15 = arith.constant 0 : index
    %30 = vector.load %arg4[%c0_14, %c0_15] : memref<128x128xbf16, #tpu.memory_space<vmem>>, vector<128x128xbf16>
    %cst_16 = arith.constant dense<0.000000e+00> : vector<8x128xf32>
    %31 = tpu.matmul %29, %30, %cst_16 {dimension_numbers = #tpu.dot_dimension_numbers<[1], [0], [0], [1], [0, 0, 1, 1], [], []>} : vector<8x128xbf16>, vector<128x128xbf16>, vector<8x128xf32> -> vector<8x128xf32>
    %32 = arith.addf %31, %8 : vector<8x128xf32>
    %33 = arith.addf %13, %32 : vector<8x128xf32>
    %cst_17 = arith.constant 1.000000e+00 : f32
    %34 = vector.broadcast %cst_17 : f32 to vector<8x128xf32>
    %35 = arith.cmpf oge, %33, %34 : vector<8x128xf32>
    %36 = arith.extui %35 : vector<8x128xi1> to vector<8x128xi32>
    %37 = arith.sitofp %36 : vector<8x128xi32> to vector<8x128xf32>
    %cst_18 = arith.constant 0.000000e+00 : f32
    %38 = vector.broadcast %cst_18 : f32 to vector<8x128xf32>
    %39 = arith.select %35, %38, %33 : vector<8x128xi1>, vector<8x128xf32>
    %40 = arith.truncf %37 : vector<8x128xf32> to vector<8x128xbf16>
    %c0_19 = arith.constant 0 : index
    %c0_20 = arith.constant 0 : index
    %41 = vector.load %arg6[%c0_19, %c0_20] : memref<128x128xbf16, #tpu.memory_space<vmem>>, vector<128x128xbf16>
    %cst_21 = arith.constant dense<0.000000e+00> : vector<8x128xf32>
    %42 = tpu.matmul %40, %41, %cst_21 {dimension_numbers = #tpu.dot_dimension_numbers<[1], [0], [0], [1], [0, 0, 1, 1], [], []>} : vector<8x128xbf16>, vector<128x128xbf16>, vector<8x128xf32> -> vector<8x128xf32>
    %43 = arith.addf %42, %11 : vector<8x128xf32>
    %44 = arith.addf %14, %43 : vector<8x128xf32>
    %cst_22 = arith.constant 1.000000e+00 : f32
    %45 = vector.broadcast %cst_22 : f32 to vector<8x128xf32>
    %46 = arith.cmpf oge, %44, %45 : vector<8x128xf32>
    %47 = arith.extui %46 : vector<8x128xi1> to vector<8x128xi32>
    %48 = arith.sitofp %47 : vector<8x128xi32> to vector<8x128xf32>
    %cst_23 = arith.constant 0.000000e+00 : f32
    %49 = vector.broadcast %cst_23 : f32 to vector<8x128xf32>
    %50 = arith.select %46, %49, %44 : vector<8x128xi1>, vector<8x128xf32>
    %51 = arith.addf %15, %48 : vector<8x128xf32>
    %c1_i32 = arith.constant 1 : i32
    %52 = arith.index_cast %c1_i32 : i32 to index
    %c0_24 = arith.constant 0 : index
    %c0_25 = arith.constant 0 : index
    %53 = vector.load %arg1[%52, %c0_24, %c0_25] : memref<8x8x1xf32, #tpu.memory_space<vmem>>, vector<1x8x1xf32>
    %54 = vector.shape_cast %53 : vector<1x8x1xf32> to vector<8x1xf32>
    %55 = vector.broadcast %54 : vector<8x1xf32> to vector<8x128xf32>
    %56 = arith.mulf %55, %2 : vector<8x128xf32>
    %57 = arith.addf %56, %5 : vector<8x128xf32>
    %58 = arith.addf %28, %57 : vector<8x128xf32>
    %cst_26 = arith.constant 1.000000e+00 : f32
    %59 = vector.broadcast %cst_26 : f32 to vector<8x128xf32>
    %60 = arith.cmpf oge, %58, %59 : vector<8x128xf32>
    %61 = arith.extui %60 : vector<8x128xi1> to vector<8x128xi32>
    %62 = arith.sitofp %61 : vector<8x128xi32> to vector<8x128xf32>
    %cst_27 = arith.constant 0.000000e+00 : f32
    %63 = vector.broadcast %cst_27 : f32 to vector<8x128xf32>
    %64 = arith.select %60, %63, %58 : vector<8x128xi1>, vector<8x128xf32>
    %65 = arith.truncf %62 : vector<8x128xf32> to vector<8x128xbf16>
    %c0_28 = arith.constant 0 : index
    %c0_29 = arith.constant 0 : index
    %66 = vector.load %arg4[%c0_28, %c0_29] : memref<128x128xbf16, #tpu.memory_space<vmem>>, vector<128x128xbf16>
    %cst_30 = arith.constant dense<0.000000e+00> : vector<8x128xf32>
    %67 = tpu.matmul %65, %66, %cst_30 {dimension_numbers = #tpu.dot_dimension_numbers<[1], [0], [0], [1], [0, 0, 1, 1], [], []>} : vector<8x128xbf16>, vector<128x128xbf16>, vector<8x128xf32> -> vector<8x128xf32>
    %68 = arith.addf %67, %8 : vector<8x128xf32>
    %69 = arith.addf %39, %68 : vector<8x128xf32>
    %cst_31 = arith.constant 1.000000e+00 : f32
    %70 = vector.broadcast %cst_31 : f32 to vector<8x128xf32>
    %71 = arith.cmpf oge, %69, %70 : vector<8x128xf32>
    %72 = arith.extui %71 : vector<8x128xi1> to vector<8x128xi32>
    %73 = arith.sitofp %72 : vector<8x128xi32> to vector<8x128xf32>
    %cst_32 = arith.constant 0.000000e+00 : f32
    %74 = vector.broadcast %cst_32 : f32 to vector<8x128xf32>
    %75 = arith.select %71, %74, %69 : vector<8x128xi1>, vector<8x128xf32>
    %76 = arith.truncf %73 : vector<8x128xf32> to vector<8x128xbf16>
    %c0_33 = arith.constant 0 : index
    %c0_34 = arith.constant 0 : index
    %77 = vector.load %arg6[%c0_33, %c0_34] : memref<128x128xbf16, #tpu.memory_space<vmem>>, vector<128x128xbf16>
    %cst_35 = arith.constant dense<0.000000e+00> : vector<8x128xf32>
    %78 = tpu.matmul %76, %77, %cst_35 {dimension_numbers = #tpu.dot_dimension_numbers<[1], [0], [0], [1], [0, 0, 1, 1], [], []>} : vector<8x128xbf16>, vector<128x128xbf16>, vector<8x128xf32> -> vector<8x128xf32>
    %79 = arith.addf %78, %11 : vector<8x128xf32>
    %80 = arith.addf %50, %79 : vector<8x128xf32>
    %cst_36 = arith.constant 1.000000e+00 : f32
    %81 = vector.broadcast %cst_36 : f32 to vector<8x128xf32>
    %82 = arith.cmpf oge, %80, %81 : vector<8x128xf32>
    %83 = arith.extui %82 : vector<8x128xi1> to vector<8x128xi32>
    %84 = arith.sitofp %83 : vector<8x128xi32> to vector<8x128xf32>
    %cst_37 = arith.constant 0.000000e+00 : f32
    %85 = vector.broadcast %cst_37 : f32 to vector<8x128xf32>
    %86 = arith.select %82, %85, %80 : vector<8x128xi1>, vector<8x128xf32>
    %87 = arith.addf %51, %84 : vector<8x128xf32>
    %c2_i32 = arith.constant 2 : i32
    %88 = arith.index_cast %c2_i32 : i32 to index
    %c0_38 = arith.constant 0 : index
    %c0_39 = arith.constant 0 : index
    %89 = vector.load %arg1[%88, %c0_38, %c0_39] : memref<8x8x1xf32, #tpu.memory_space<vmem>>, vector<1x8x1xf32>
    %90 = vector.shape_cast %89 : vector<1x8x1xf32> to vector<8x1xf32>
    %91 = vector.broadcast %90 : vector<8x1xf32> to vector<8x128xf32>
    %92 = arith.mulf %91, %2 : vector<8x128xf32>
    %93 = arith.addf %92, %5 : vector<8x128xf32>
    %94 = arith.addf %64, %93 : vector<8x128xf32>
    %cst_40 = arith.constant 1.000000e+00 : f32
    %95 = vector.broadcast %cst_40 : f32 to vector<8x128xf32>
    %96 = arith.cmpf oge, %94, %95 : vector<8x128xf32>
    %97 = arith.extui %96 : vector<8x128xi1> to vector<8x128xi32>
    %98 = arith.sitofp %97 : vector<8x128xi32> to vector<8x128xf32>
    %cst_41 = arith.constant 0.000000e+00 : f32
    %99 = vector.broadcast %cst_41 : f32 to vector<8x128xf32>
    %100 = arith.select %96, %99, %94 : vector<8x128xi1>, vector<8x128xf32>
    %101 = arith.truncf %98 : vector<8x128xf32> to vector<8x128xbf16>
    %c0_42 = arith.constant 0 : index
    %c0_43 = arith.constant 0 : index
    %102 = vector.load %arg4[%c0_42, %c0_43] : memref<128x128xbf16, #tpu.memory_space<vmem>>, vector<128x128xbf16>
    %cst_44 = arith.constant dense<0.000000e+00> : vector<8x128xf32>
    %103 = tpu.matmul %101, %102, %cst_44 {dimension_numbers = #tpu.dot_dimension_numbers<[1], [0], [0], [1], [0, 0, 1, 1], [], []>} : vector<8x128xbf16>, vector<128x128xbf16>, vector<8x128xf32> -> vector<8x128xf32>
    %104 = arith.addf %103, %8 : vector<8x128xf32>
    %105 = arith.addf %75, %104 : vector<8x128xf32>
    %cst_45 = arith.constant 1.000000e+00 : f32
    %106 = vector.broadcast %cst_45 : f32 to vector<8x128xf32>
    %107 = arith.cmpf oge, %105, %106 : vector<8x128xf32>
    %108 = arith.extui %107 : vector<8x128xi1> to vector<8x128xi32>
    %109 = arith.sitofp %108 : vector<8x128xi32> to vector<8x128xf32>
    %cst_46 = arith.constant 0.000000e+00 : f32
    %110 = vector.broadcast %cst_46 : f32 to vector<8x128xf32>
    %111 = arith.select %107, %110, %105 : vector<8x128xi1>, vector<8x128xf32>
    %112 = arith.truncf %109 : vector<8x128xf32> to vector<8x128xbf16>
    %c0_47 = arith.constant 0 : index
    %c0_48 = arith.constant 0 : index
    %113 = vector.load %arg6[%c0_47, %c0_48] : memref<128x128xbf16, #tpu.memory_space<vmem>>, vector<128x128xbf16>
    %cst_49 = arith.constant dense<0.000000e+00> : vector<8x128xf32>
    %114 = tpu.matmul %112, %113, %cst_49 {dimension_numbers = #tpu.dot_dimension_numbers<[1], [0], [0], [1], [0, 0, 1, 1], [], []>} : vector<8x128xbf16>, vector<128x128xbf16>, vector<8x128xf32> -> vector<8x128xf32>
    %115 = arith.addf %114, %11 : vector<8x128xf32>
    %116 = arith.addf %86, %115 : vector<8x128xf32>
    %cst_50 = arith.constant 1.000000e+00 : f32
    %117 = vector.broadcast %cst_50 : f32 to vector<8x128xf32>
    %118 = arith.cmpf oge, %116, %117 : vector<8x128xf32>
    %119 = arith.extui %118 : vector<8x128xi1> to vector<8x128xi32>
    %120 = arith.sitofp %119 : vector<8x128xi32> to vector<8x128xf32>
    %cst_51 = arith.constant 0.000000e+00 : f32
    %121 = vector.broadcast %cst_51 : f32 to vector<8x128xf32>
    %122 = arith.select %118, %121, %116 : vector<8x128xi1>, vector<8x128xf32>
    %123 = arith.addf %87, %120 : vector<8x128xf32>
    %c3_i32 = arith.constant 3 : i32
    %124 = arith.index_cast %c3_i32 : i32 to index
    %c0_52 = arith.constant 0 : index
    %c0_53 = arith.constant 0 : index
    %125 = vector.load %arg1[%124, %c0_52, %c0_53] : memref<8x8x1xf32, #tpu.memory_space<vmem>>, vector<1x8x1xf32>
    %126 = vector.shape_cast %125 : vector<1x8x1xf32> to vector<8x1xf32>
    %127 = vector.broadcast %126 : vector<8x1xf32> to vector<8x128xf32>
    %128 = arith.mulf %127, %2 : vector<8x128xf32>
    %129 = arith.addf %128, %5 : vector<8x128xf32>
    %130 = arith.addf %100, %129 : vector<8x128xf32>
    %cst_54 = arith.constant 1.000000e+00 : f32
    %131 = vector.broadcast %cst_54 : f32 to vector<8x128xf32>
    %132 = arith.cmpf oge, %130, %131 : vector<8x128xf32>
    %133 = arith.extui %132 : vector<8x128xi1> to vector<8x128xi32>
    %134 = arith.sitofp %133 : vector<8x128xi32> to vector<8x128xf32>
    %cst_55 = arith.constant 0.000000e+00 : f32
    %135 = vector.broadcast %cst_55 : f32 to vector<8x128xf32>
    %136 = arith.select %132, %135, %130 : vector<8x128xi1>, vector<8x128xf32>
    %137 = arith.truncf %134 : vector<8x128xf32> to vector<8x128xbf16>
    %c0_56 = arith.constant 0 : index
    %c0_57 = arith.constant 0 : index
    %138 = vector.load %arg4[%c0_56, %c0_57] : memref<128x128xbf16, #tpu.memory_space<vmem>>, vector<128x128xbf16>
    %cst_58 = arith.constant dense<0.000000e+00> : vector<8x128xf32>
    %139 = tpu.matmul %137, %138, %cst_58 {dimension_numbers = #tpu.dot_dimension_numbers<[1], [0], [0], [1], [0, 0, 1, 1], [], []>} : vector<8x128xbf16>, vector<128x128xbf16>, vector<8x128xf32> -> vector<8x128xf32>
    %140 = arith.addf %139, %8 : vector<8x128xf32>
    %141 = arith.addf %111, %140 : vector<8x128xf32>
    %cst_59 = arith.constant 1.000000e+00 : f32
    %142 = vector.broadcast %cst_59 : f32 to vector<8x128xf32>
    %143 = arith.cmpf oge, %141, %142 : vector<8x128xf32>
    %144 = arith.extui %143 : vector<8x128xi1> to vector<8x128xi32>
    %145 = arith.sitofp %144 : vector<8x128xi32> to vector<8x128xf32>
    %cst_60 = arith.constant 0.000000e+00 : f32
    %146 = vector.broadcast %cst_60 : f32 to vector<8x128xf32>
    %147 = arith.select %143, %146, %141 : vector<8x128xi1>, vector<8x128xf32>
    %148 = arith.truncf %145 : vector<8x128xf32> to vector<8x128xbf16>
    %c0_61 = arith.constant 0 : index
    %c0_62 = arith.constant 0 : index
    %149 = vector.load %arg6[%c0_61, %c0_62] : memref<128x128xbf16, #tpu.memory_space<vmem>>, vector<128x128xbf16>
    %cst_63 = arith.constant dense<0.000000e+00> : vector<8x128xf32>
    %150 = tpu.matmul %148, %149, %cst_63 {dimension_numbers = #tpu.dot_dimension_numbers<[1], [0], [0], [1], [0, 0, 1, 1], [], []>} : vector<8x128xbf16>, vector<128x128xbf16>, vector<8x128xf32> -> vector<8x128xf32>
    %151 = arith.addf %150, %11 : vector<8x128xf32>
    %152 = arith.addf %122, %151 : vector<8x128xf32>
    %cst_64 = arith.constant 1.000000e+00 : f32
    %153 = vector.broadcast %cst_64 : f32 to vector<8x128xf32>
    %154 = arith.cmpf oge, %152, %153 : vector<8x128xf32>
    %155 = arith.extui %154 : vector<8x128xi1> to vector<8x128xi32>
    %156 = arith.sitofp %155 : vector<8x128xi32> to vector<8x128xf32>
    %cst_65 = arith.constant 0.000000e+00 : f32
    %157 = vector.broadcast %cst_65 : f32 to vector<8x128xf32>
    %158 = arith.select %154, %157, %152 : vector<8x128xi1>, vector<8x128xf32>
    %159 = arith.addf %123, %156 : vector<8x128xf32>
    %c4_i32 = arith.constant 4 : i32
    %160 = arith.index_cast %c4_i32 : i32 to index
    %c0_66 = arith.constant 0 : index
    %c0_67 = arith.constant 0 : index
    %161 = vector.load %arg1[%160, %c0_66, %c0_67] : memref<8x8x1xf32, #tpu.memory_space<vmem>>, vector<1x8x1xf32>
    %162 = vector.shape_cast %161 : vector<1x8x1xf32> to vector<8x1xf32>
    %163 = vector.broadcast %162 : vector<8x1xf32> to vector<8x128xf32>
    %164 = arith.mulf %163, %2 : vector<8x128xf32>
    %165 = arith.addf %164, %5 : vector<8x128xf32>
    %166 = arith.addf %136, %165 : vector<8x128xf32>
    %cst_68 = arith.constant 1.000000e+00 : f32
    %167 = vector.broadcast %cst_68 : f32 to vector<8x128xf32>
    %168 = arith.cmpf oge, %166, %167 : vector<8x128xf32>
    %169 = arith.extui %168 : vector<8x128xi1> to vector<8x128xi32>
    %170 = arith.sitofp %169 : vector<8x128xi32> to vector<8x128xf32>
    %cst_69 = arith.constant 0.000000e+00 : f32
    %171 = vector.broadcast %cst_69 : f32 to vector<8x128xf32>
    %172 = arith.select %168, %171, %166 : vector<8x128xi1>, vector<8x128xf32>
    %173 = arith.truncf %170 : vector<8x128xf32> to vector<8x128xbf16>
    %c0_70 = arith.constant 0 : index
    %c0_71 = arith.constant 0 : index
    %174 = vector.load %arg4[%c0_70, %c0_71] : memref<128x128xbf16, #tpu.memory_space<vmem>>, vector<128x128xbf16>
    %cst_72 = arith.constant dense<0.000000e+00> : vector<8x128xf32>
    %175 = tpu.matmul %173, %174, %cst_72 {dimension_numbers = #tpu.dot_dimension_numbers<[1], [0], [0], [1], [0, 0, 1, 1], [], []>} : vector<8x128xbf16>, vector<128x128xbf16>, vector<8x128xf32> -> vector<8x128xf32>
    %176 = arith.addf %175, %8 : vector<8x128xf32>
    %177 = arith.addf %147, %176 : vector<8x128xf32>
    %cst_73 = arith.constant 1.000000e+00 : f32
    %178 = vector.broadcast %cst_73 : f32 to vector<8x128xf32>
    %179 = arith.cmpf oge, %177, %178 : vector<8x128xf32>
    %180 = arith.extui %179 : vector<8x128xi1> to vector<8x128xi32>
    %181 = arith.sitofp %180 : vector<8x128xi32> to vector<8x128xf32>
    %cst_74 = arith.constant 0.000000e+00 : f32
    %182 = vector.broadcast %cst_74 : f32 to vector<8x128xf32>
    %183 = arith.select %179, %182, %177 : vector<8x128xi1>, vector<8x128xf32>
    %184 = arith.truncf %181 : vector<8x128xf32> to vector<8x128xbf16>
    %c0_75 = arith.constant 0 : index
    %c0_76 = arith.constant 0 : index
    %185 = vector.load %arg6[%c0_75, %c0_76] : memref<128x128xbf16, #tpu.memory_space<vmem>>, vector<128x128xbf16>
    %cst_77 = arith.constant dense<0.000000e+00> : vector<8x128xf32>
    %186 = tpu.matmul %184, %185, %cst_77 {dimension_numbers = #tpu.dot_dimension_numbers<[1], [0], [0], [1], [0, 0, 1, 1], [], []>} : vector<8x128xbf16>, vector<128x128xbf16>, vector<8x128xf32> -> vector<8x128xf32>
    %187 = arith.addf %186, %11 : vector<8x128xf32>
    %188 = arith.addf %158, %187 : vector<8x128xf32>
    %cst_78 = arith.constant 1.000000e+00 : f32
    %189 = vector.broadcast %cst_78 : f32 to vector<8x128xf32>
    %190 = arith.cmpf oge, %188, %189 : vector<8x128xf32>
    %191 = arith.extui %190 : vector<8x128xi1> to vector<8x128xi32>
    %192 = arith.sitofp %191 : vector<8x128xi32> to vector<8x128xf32>
    %cst_79 = arith.constant 0.000000e+00 : f32
    %193 = vector.broadcast %cst_79 : f32 to vector<8x128xf32>
    %194 = arith.select %190, %193, %188 : vector<8x128xi1>, vector<8x128xf32>
    %195 = arith.addf %159, %192 : vector<8x128xf32>
    %c5_i32 = arith.constant 5 : i32
    %196 = arith.index_cast %c5_i32 : i32 to index
    %c0_80 = arith.constant 0 : index
    %c0_81 = arith.constant 0 : index
    %197 = vector.load %arg1[%196, %c0_80, %c0_81] : memref<8x8x1xf32, #tpu.memory_space<vmem>>, vector<1x8x1xf32>
    %198 = vector.shape_cast %197 : vector<1x8x1xf32> to vector<8x1xf32>
    %199 = vector.broadcast %198 : vector<8x1xf32> to vector<8x128xf32>
    %200 = arith.mulf %199, %2 : vector<8x128xf32>
    %201 = arith.addf %200, %5 : vector<8x128xf32>
    %202 = arith.addf %172, %201 : vector<8x128xf32>
    %cst_82 = arith.constant 1.000000e+00 : f32
    %203 = vector.broadcast %cst_82 : f32 to vector<8x128xf32>
    %204 = arith.cmpf oge, %202, %203 : vector<8x128xf32>
    %205 = arith.extui %204 : vector<8x128xi1> to vector<8x128xi32>
    %206 = arith.sitofp %205 : vector<8x128xi32> to vector<8x128xf32>
    %cst_83 = arith.constant 0.000000e+00 : f32
    %207 = vector.broadcast %cst_83 : f32 to vector<8x128xf32>
    %208 = arith.select %204, %207, %202 : vector<8x128xi1>, vector<8x128xf32>
    %209 = arith.truncf %206 : vector<8x128xf32> to vector<8x128xbf16>
    %c0_84 = arith.constant 0 : index
    %c0_85 = arith.constant 0 : index
    %210 = vector.load %arg4[%c0_84, %c0_85] : memref<128x128xbf16, #tpu.memory_space<vmem>>, vector<128x128xbf16>
    %cst_86 = arith.constant dense<0.000000e+00> : vector<8x128xf32>
    %211 = tpu.matmul %209, %210, %cst_86 {dimension_numbers = #tpu.dot_dimension_numbers<[1], [0], [0], [1], [0, 0, 1, 1], [], []>} : vector<8x128xbf16>, vector<128x128xbf16>, vector<8x128xf32> -> vector<8x128xf32>
    %212 = arith.addf %211, %8 : vector<8x128xf32>
    %213 = arith.addf %183, %212 : vector<8x128xf32>
    %cst_87 = arith.constant 1.000000e+00 : f32
    %214 = vector.broadcast %cst_87 : f32 to vector<8x128xf32>
    %215 = arith.cmpf oge, %213, %214 : vector<8x128xf32>
    %216 = arith.extui %215 : vector<8x128xi1> to vector<8x128xi32>
    %217 = arith.sitofp %216 : vector<8x128xi32> to vector<8x128xf32>
    %cst_88 = arith.constant 0.000000e+00 : f32
    %218 = vector.broadcast %cst_88 : f32 to vector<8x128xf32>
    %219 = arith.select %215, %218, %213 : vector<8x128xi1>, vector<8x128xf32>
    %220 = arith.truncf %217 : vector<8x128xf32> to vector<8x128xbf16>
    %c0_89 = arith.constant 0 : index
    %c0_90 = arith.constant 0 : index
    %221 = vector.load %arg6[%c0_89, %c0_90] : memref<128x128xbf16, #tpu.memory_space<vmem>>, vector<128x128xbf16>
    %cst_91 = arith.constant dense<0.000000e+00> : vector<8x128xf32>
    %222 = tpu.matmul %220, %221, %cst_91 {dimension_numbers = #tpu.dot_dimension_numbers<[1], [0], [0], [1], [0, 0, 1, 1], [], []>} : vector<8x128xbf16>, vector<128x128xbf16>, vector<8x128xf32> -> vector<8x128xf32>
    %223 = arith.addf %222, %11 : vector<8x128xf32>
    %224 = arith.addf %194, %223 : vector<8x128xf32>
    %cst_92 = arith.constant 1.000000e+00 : f32
    %225 = vector.broadcast %cst_92 : f32 to vector<8x128xf32>
    %226 = arith.cmpf oge, %224, %225 : vector<8x128xf32>
    %227 = arith.extui %226 : vector<8x128xi1> to vector<8x128xi32>
    %228 = arith.sitofp %227 : vector<8x128xi32> to vector<8x128xf32>
    %cst_93 = arith.constant 0.000000e+00 : f32
    %229 = vector.broadcast %cst_93 : f32 to vector<8x128xf32>
    %230 = arith.select %226, %229, %224 : vector<8x128xi1>, vector<8x128xf32>
    %231 = arith.addf %195, %228 : vector<8x128xf32>
    %c6_i32 = arith.constant 6 : i32
    %232 = arith.index_cast %c6_i32 : i32 to index
    %c0_94 = arith.constant 0 : index
    %c0_95 = arith.constant 0 : index
    %233 = vector.load %arg1[%232, %c0_94, %c0_95] : memref<8x8x1xf32, #tpu.memory_space<vmem>>, vector<1x8x1xf32>
    %234 = vector.shape_cast %233 : vector<1x8x1xf32> to vector<8x1xf32>
    %235 = vector.broadcast %234 : vector<8x1xf32> to vector<8x128xf32>
    %236 = arith.mulf %235, %2 : vector<8x128xf32>
    %237 = arith.addf %236, %5 : vector<8x128xf32>
    %238 = arith.addf %208, %237 : vector<8x128xf32>
    %cst_96 = arith.constant 1.000000e+00 : f32
    %239 = vector.broadcast %cst_96 : f32 to vector<8x128xf32>
    %240 = arith.cmpf oge, %238, %239 : vector<8x128xf32>
    %241 = arith.extui %240 : vector<8x128xi1> to vector<8x128xi32>
    %242 = arith.sitofp %241 : vector<8x128xi32> to vector<8x128xf32>
    %cst_97 = arith.constant 0.000000e+00 : f32
    %243 = vector.broadcast %cst_97 : f32 to vector<8x128xf32>
    %244 = arith.select %240, %243, %238 : vector<8x128xi1>, vector<8x128xf32>
    %245 = arith.truncf %242 : vector<8x128xf32> to vector<8x128xbf16>
    %c0_98 = arith.constant 0 : index
    %c0_99 = arith.constant 0 : index
    %246 = vector.load %arg4[%c0_98, %c0_99] : memref<128x128xbf16, #tpu.memory_space<vmem>>, vector<128x128xbf16>
    %cst_100 = arith.constant dense<0.000000e+00> : vector<8x128xf32>
    %247 = tpu.matmul %245, %246, %cst_100 {dimension_numbers = #tpu.dot_dimension_numbers<[1], [0], [0], [1], [0, 0, 1, 1], [], []>} : vector<8x128xbf16>, vector<128x128xbf16>, vector<8x128xf32> -> vector<8x128xf32>
    %248 = arith.addf %247, %8 : vector<8x128xf32>
    %249 = arith.addf %219, %248 : vector<8x128xf32>
    %cst_101 = arith.constant 1.000000e+00 : f32
    %250 = vector.broadcast %cst_101 : f32 to vector<8x128xf32>
    %251 = arith.cmpf oge, %249, %250 : vector<8x128xf32>
    %252 = arith.extui %251 : vector<8x128xi1> to vector<8x128xi32>
    %253 = arith.sitofp %252 : vector<8x128xi32> to vector<8x128xf32>
    %cst_102 = arith.constant 0.000000e+00 : f32
    %254 = vector.broadcast %cst_102 : f32 to vector<8x128xf32>
    %255 = arith.select %251, %254, %249 : vector<8x128xi1>, vector<8x128xf32>
    %256 = arith.truncf %253 : vector<8x128xf32> to vector<8x128xbf16>
    %c0_103 = arith.constant 0 : index
    %c0_104 = arith.constant 0 : index
    %257 = vector.load %arg6[%c0_103, %c0_104] : memref<128x128xbf16, #tpu.memory_space<vmem>>, vector<128x128xbf16>
    %cst_105 = arith.constant dense<0.000000e+00> : vector<8x128xf32>
    %258 = tpu.matmul %256, %257, %cst_105 {dimension_numbers = #tpu.dot_dimension_numbers<[1], [0], [0], [1], [0, 0, 1, 1], [], []>} : vector<8x128xbf16>, vector<128x128xbf16>, vector<8x128xf32> -> vector<8x128xf32>
    %259 = arith.addf %258, %11 : vector<8x128xf32>
    %260 = arith.addf %230, %259 : vector<8x128xf32>
    %cst_106 = arith.constant 1.000000e+00 : f32
    %261 = vector.broadcast %cst_106 : f32 to vector<8x128xf32>
    %262 = arith.cmpf oge, %260, %261 : vector<8x128xf32>
    %263 = arith.extui %262 : vector<8x128xi1> to vector<8x128xi32>
    %264 = arith.sitofp %263 : vector<8x128xi32> to vector<8x128xf32>
    %cst_107 = arith.constant 0.000000e+00 : f32
    %265 = vector.broadcast %cst_107 : f32 to vector<8x128xf32>
    %266 = arith.select %262, %265, %260 : vector<8x128xi1>, vector<8x128xf32>
    %267 = arith.addf %231, %264 : vector<8x128xf32>
    %c7_i32 = arith.constant 7 : i32
    %268 = arith.index_cast %c7_i32 : i32 to index
    %c0_108 = arith.constant 0 : index
    %c0_109 = arith.constant 0 : index
    %269 = vector.load %arg1[%268, %c0_108, %c0_109] : memref<8x8x1xf32, #tpu.memory_space<vmem>>, vector<1x8x1xf32>
    %270 = vector.shape_cast %269 : vector<1x8x1xf32> to vector<8x1xf32>
    %271 = vector.broadcast %270 : vector<8x1xf32> to vector<8x128xf32>
    %272 = arith.mulf %271, %2 : vector<8x128xf32>
    %273 = arith.addf %272, %5 : vector<8x128xf32>
    %274 = arith.addf %244, %273 : vector<8x128xf32>
    %cst_110 = arith.constant 1.000000e+00 : f32
    %275 = vector.broadcast %cst_110 : f32 to vector<8x128xf32>
    %276 = arith.cmpf oge, %274, %275 : vector<8x128xf32>
    %277 = arith.extui %276 : vector<8x128xi1> to vector<8x128xi32>
    %278 = arith.sitofp %277 : vector<8x128xi32> to vector<8x128xf32>
    %cst_111 = arith.constant 0.000000e+00 : f32
    %279 = vector.broadcast %cst_111 : f32 to vector<8x128xf32>
    %280 = arith.select %276, %279, %274 : vector<8x128xi1>, vector<8x128xf32>
    %281 = arith.truncf %278 : vector<8x128xf32> to vector<8x128xbf16>
    %c0_112 = arith.constant 0 : index
    %c0_113 = arith.constant 0 : index
    %282 = vector.load %arg4[%c0_112, %c0_113] : memref<128x128xbf16, #tpu.memory_space<vmem>>, vector<128x128xbf16>
    %cst_114 = arith.constant dense<0.000000e+00> : vector<8x128xf32>
    %283 = tpu.matmul %281, %282, %cst_114 {dimension_numbers = #tpu.dot_dimension_numbers<[1], [0], [0], [1], [0, 0, 1, 1], [], []>} : vector<8x128xbf16>, vector<128x128xbf16>, vector<8x128xf32> -> vector<8x128xf32>
    %284 = arith.addf %283, %8 : vector<8x128xf32>
    %285 = arith.addf %255, %284 : vector<8x128xf32>
    %cst_115 = arith.constant 1.000000e+00 : f32
    %286 = vector.broadcast %cst_115 : f32 to vector<8x128xf32>
    %287 = arith.cmpf oge, %285, %286 : vector<8x128xf32>
    %288 = arith.extui %287 : vector<8x128xi1> to vector<8x128xi32>
    %289 = arith.sitofp %288 : vector<8x128xi32> to vector<8x128xf32>
    %cst_116 = arith.constant 0.000000e+00 : f32
    %290 = vector.broadcast %cst_116 : f32 to vector<8x128xf32>
    %291 = arith.select %287, %290, %285 : vector<8x128xi1>, vector<8x128xf32>
    %292 = arith.truncf %289 : vector<8x128xf32> to vector<8x128xbf16>
    %c0_117 = arith.constant 0 : index
    %c0_118 = arith.constant 0 : index
    %293 = vector.load %arg6[%c0_117, %c0_118] : memref<128x128xbf16, #tpu.memory_space<vmem>>, vector<128x128xbf16>
    %cst_119 = arith.constant dense<0.000000e+00> : vector<8x128xf32>
    %294 = tpu.matmul %292, %293, %cst_119 {dimension_numbers = #tpu.dot_dimension_numbers<[1], [0], [0], [1], [0, 0, 1, 1], [], []>} : vector<8x128xbf16>, vector<128x128xbf16>, vector<8x128xf32> -> vector<8x128xf32>
    %295 = arith.addf %294, %11 : vector<8x128xf32>
    %296 = arith.addf %266, %295 : vector<8x128xf32>
    %cst_120 = arith.constant 1.000000e+00 : f32
    %297 = vector.broadcast %cst_120 : f32 to vector<8x128xf32>
    %298 = arith.cmpf oge, %296, %297 : vector<8x128xf32>
    %299 = arith.extui %298 : vector<8x128xi1> to vector<8x128xi32>
    %300 = arith.sitofp %299 : vector<8x128xi32> to vector<8x128xf32>
    %cst_121 = arith.constant 0.000000e+00 : f32
    %301 = vector.broadcast %cst_121 : f32 to vector<8x128xf32>
    %302 = arith.select %298, %301, %296 : vector<8x128xi1>, vector<8x128xf32>
    %303 = arith.addf %267, %300 : vector<8x128xf32>
    %c8_i32 = arith.constant 8 : i32
    %cst_122 = arith.constant 1.250000e-01 : f32
    %304 = vector.broadcast %cst_122 : f32 to vector<8x128xf32>
    %305 = arith.mulf %303, %304 : vector<8x128xf32>
    %c0_123 = arith.constant 0 : index
    %c0_124 = arith.constant 0 : index
    %306 = vector.load %arg8[%c0_123, %c0_124] : memref<8x128xf32, #tpu.memory_space<vmem>>, vector<8x128xf32>
    tpu.vector_store %arg8[%c0_123, %c0_124], %305 {strides = array<i32>} : memref<8x128xf32, #tpu.memory_space<vmem>>, vector<8x128xf32>,
    return
  }
  func.func @transform_0(%arg0: i32) -> (i32, i32, i32) {
    %c0_i32 = arith.constant 0 : i32
    %c0_i32_0 = arith.constant 0 : i32
    %c0_i32_1 = arith.constant 0 : i32
    return %c0_i32, %arg0, %c0_i32_0 : i32, i32, i32
  }
  func.func @transform_1(%arg0: i32) -> (i32, i32) {
    %c0_i32 = arith.constant 0 : i32
    %c0_i32_0 = arith.constant 0 : i32
    %c0_i32_1 = arith.constant 0 : i32
    return %c0_i32, %c0_i32_0 : i32, i32
  }
  func.func @transform_2(%arg0: i32) -> (i32, i32) {
    %c0_i32 = arith.constant 0 : i32
    %c0_i32_0 = arith.constant 0 : i32
    %c0_i32_1 = arith.constant 0 : i32
    return %c0_i32, %c0_i32_0 : i32, i32
  }
  func.func @transform_3(%arg0: i32) -> (i32, i32) {
    %c0_i32 = arith.constant 0 : i32
    %c0_i32_0 = arith.constant 0 : i32
    %c0_i32_1 = arith.constant 0 : i32
    return %c0_i32, %c0_i32_0 : i32, i32
  }
  func.func @transform_4(%arg0: i32) -> (i32, i32) {
    %c0_i32 = arith.constant 0 : i32
    %c0_i32_0 = arith.constant 0 : i32
    %c0_i32_1 = arith.constant 0 : i32
    return %c0_i32, %c0_i32_0 : i32, i32
  }
  func.func @transform_5(%arg0: i32) -> (i32, i32) {
    %c0_i32 = arith.constant 0 : i32
    %c0_i32_0 = arith.constant 0 : i32
    %c0_i32_1 = arith.constant 0 : i32
    return %c0_i32, %c0_i32_0 : i32, i32
  }
  func.func @transform_6(%arg0: i32) -> (i32, i32) {
    %c0_i32 = arith.constant 0 : i32
    %c0_i32_0 = arith.constant 0 : i32
    %c0_i32_1 = arith.constant 0 : i32
    return %c0_i32, %c0_i32_0 : i32, i32
  }
  func.func @transform_7(%arg0: i32) -> (i32, i32) {
    %c0_i32 = arith.constant 0 : i32
    %c0_i32_0 = arith.constant 0 : i32
    return %arg0, %c0_i32 : i32, i32
  }
}

</mosaic_0001>

<bundles_post_ra>
// kernel: tp_forward.1
= control target key start
LH: loop header
LB: loop body
LE: loop exit
PB: predicated region body
PF: predicated region fallthrough
CT: control target
= control target key end

     0   :  { %12 = vsyncpa [#allocation3], 0  ;;  %s1652_s24 = smov [#allocation2]   ;;  %s2204_s0 = inlined_call_operand.vmem [shape: f32[8,8,1], index: 0, kind: input, shape index: {}]   ;;  %s2205_s1 = inlined_call_operand.vmem [shape: f32[1,128], index: 1, kind: input, shape index: {}]   ;;  %s2206_s2 = inlined_call_operand.vmem [shape: f32[1,128], index: 2, kind: input, shape index: {}]   ;;  %s2207_s3 = inlined_call_operand.vmem [shape: bf16[128,128], index: 3, kind: input, shape index: {}]   ;;  %s2208_s4 = inlined_call_operand.vmem [shape: f32[1,128], index: 4, kind: input, shape index: {}]   ;;  %s2209_s5 = inlined_call_operand.hbm [shape: bf16[128,128], index: 5, kind: input, shape index: {}]   ;;  %s2210_s6 = inlined_call_operand.vmem [shape: f32[1,128], index: 6, kind: input, shape index: {}]   ;;  %s2211_s7 = inlined_call_operand.vmem [shape: f32[8,128], index: 7, kind: output, shape index: {}]  }
   0x1   :  { %s28_s25 = sshll.u32 %s1652_s24, 4  ;;  %s1628_s28 = scalar_lea.hbm %s2209_s5, 1024  ;;  %s29_s25 = int_to_ptr.vmem [resolvable:$true] %s28_s25 }
   0x2   :  { %p1629_p0 = scmp.ne.s32.totalorder %s2209_s5, %s1628_s28  ;;  %p1632_p1 = scmp.lt.u32.totalorder %s1628_s28, %s2209_s5 }
   0x4   :  { %p1634_p2 = pnand %p1632_p1, %p1629_p0 }
   0x6   :  { %1637 = shalt.err (!%p1634_p2)
}
   0x7   :  { %s1638_s10 = scalar_lea.vmem %s29_s25, 1024  ;;  %p1643_p4 = scmp.lt.s32.totalorder %s29_s25, %s29_s25 }
   0x8   :  { %p1639_p3 = scmp.ne.s32.totalorder %s29_s25, %s1638_s10  ;;  %p1644_p5 = scmp.lt.s32.totalorder %s1638_s10, %s1638_s10 }
   0xa   :  { %p1645_p6 = por %p1644_p5, %p1643_p4 }
   0xc   :  { %p1646_p7 = pnand %p1645_p6, %p1639_p3 }
   0xe   :  { %1649 = shalt.err (!%p1646_p7)
}
   0xf   :  { %s1653_s11 = smov 64   ;;  %s1654_s12 = smov 4  }
  0x10   :  { %34 = dma.hbm_to_vmem [thread:$0]  %s2209_s5, 1024, %s29_s25, [#allocation3], %s1653_s11, %s1653_s11, %s1654_s12  }
  0x11   :  { %1650 = dma.done.wait [#allocation3], 1024  }
  0x12   :  { %1651 = vsyncadd [#allocation3], 4294966272  ;;  %v1655_v0 = vmov 0   ;;  %v1656_v1 = vmov 0.0   ;;  %v69_v2 = vld [vmem:[%s2204_s0] sm:$0xff]  ;;  %v1091_v3 = vld [vmem:[%s2204_s0 + $0x10] sm:$0xff] }
  0x13   :  { %1610 = vset.pattern.permute.xlu0 %v1655_v0  ;;  %1611 = vset.pattern.permute.xlu1 %v1655_v0  ;;  %v1083_v4 = vld [vmem:[%s2204_s0 + $0x8] sm:$0xff]  ;;  %v1099_v5 = vld [vmem:[%s2204_s0 + $0x18] sm:$0xff]  ;;  %v1728_v6 = vld [vmem:[%s2207_s3] sm:$0xff]   ;;  %vm1657_vm0 = vmmov 0   ;;  %v1658_v30 = vmov 1.0|1.0  }
  0x14   :  { %1283 = vmatprep.subr.bf16.mxu0 %v1656_v1  ;;  %1303 = vmatprep.subr.bf16.mxu1 %v1656_v1  ;;  %v1107_v7 = vld [vmem:[%s2204_s0 + $0x20] sm:$0xff]  ;;  %v1115_v8 = vld [vmem:[%s2204_s0 + $0x28] sm:$0xff]  ;;  %v1123_v10 = vld [vmem:[%s2204_s0 + $0x30] sm:$0xff] }
  0x15   :  { %72 = vperm.xlu0 %1610, %v69_v2   ;;  %414 = vperm.xlu1 %1611, %v1091_v3   ;;  %v1740_v9 = vld [vmem:[%s2207_s3 + $0x8] sm:$0xff]   ;;  %v1131_v11 = vld [vmem:[%s2204_s0 + $0x38] sm:$0xff]  ;;  %v1757_v12 = vld [vmem:[%s2207_s3 + $0x10] sm:$0xff]  }
  0x16   :  { %1284 = vmatpush3.bf16.msra.mxu0 %v1728_v6  ;;  %1299 = vmatprep.mubr.msk.bf16.mxu0 %vm1657_vm0, %v1656_v1  ;;  %v1763_v13 = vld [vmem:[%s2207_s3 + $0x18] sm:$0xff]   ;;  %v1771_v14 = vld [vmem:[%s2207_s3 + $0x20] sm:$0xff]   ;;  %v1778_v15 = vld [vmem:[%s2207_s3 + $0x28] sm:$0xff]  }
  0x17   :  { %1285 = vmatprep.subr.bf16.mxu0 %v1656_v1  ;;  %1319 = vmatprep.mubr.msk.bf16.mxu1 %vm1657_vm0, %v1656_v1  ;;  %v1785_v16 = vld [vmem:[%s2207_s3 + $0x30] sm:$0xff]   ;;  %v1792_v17 = vld [vmem:[%s2207_s3 + $0x38] sm:$0xff]   ;;  %v1056_v18 = vld [vmem:[%s2205_s1] ss:$0 sm:$0xff] }
  0x18   :  { %v1057_v20 = vld [vmem:[%s2206_s2] ss:$0 sm:$0xff]  ;;  %v1873_v60 = vld [vmem:[#allocation2 + $0x8] sm:$0xff]   ;;  %v1882_v61 = vld [vmem:[#allocation2 + $0x10] sm:$0xff]  }
  0x19   :  { %307 = vperm.xlu0 %1610, %v1083_v4   ;;  %521 = vperm.xlu1 %1611, %v1099_v5   ;;  %v1867_v59 = vld [vmem:[#allocation2] sm:$0xff]   ;;  %v1890_v62 = vld [vmem:[#allocation2 + $0x18] sm:$0xff]   ;;  %v1902_v0 = vld [vmem:[#allocation2 + $0x28] sm:$0xff]  }
  0x1a   :  { %1286 = vmatpush3.bf16.msra.mxu0 %v1740_v9  ;;  %1304 = vmatpush3.bf16.msra.mxu1 %v1867_v59  ;;  %v1896_v63 = vld [vmem:[#allocation2 + $0x20] sm:$0xff]   ;;  %v1908_v2 = vld [vmem:[#allocation2 + $0x30] sm:$0xff]   ;;  %v1914_v3 = vld [vmem:[#allocation2 + $0x38] sm:$0xff]  }
  0x1b   :  { %1287 = vmatprep.subr.bf16.mxu0 %v1656_v1  ;;  %1305 = vmatprep.subr.bf16.mxu1 %v1656_v1  ;;  %v2008_v4 = vld [vmem:[%s2208_s4] ss:$0 sm:$0xff] }
  0x1d   :  { %628 = vperm.xlu0 %1610, %v1107_v7   ;;  %735 = vperm.xlu1 %1611, %v1115_v8  }
  0x1e   :  { %1288 = vmatpush3.bf16.msra.mxu0 %v1757_v12  ;;  %1306 = vmatpush3.bf16.msra.mxu1 %v1873_v60 }
  0x1f   :  { %1289 = vmatprep.subr.bf16.mxu0 %v1656_v1  ;;  %1307 = vmatprep.subr.bf16.mxu1 %v1656_v1 }
  0x21   :  { %842 = vperm.xlu0 %1610, %v1123_v10   ;;  %949 = vperm.xlu1 %1611, %v1131_v11  }
  0x22   :  { %1290 = vmatpush3.bf16.msra.mxu0 %v1763_v13  ;;  %1308 = vmatpush3.bf16.msra.mxu1 %v1882_v61 }
  0x23   :  { %1291 = vmatprep.subr.bf16.mxu0 %v1656_v1  ;;  %1309 = vmatprep.subr.bf16.mxu1 %v1656_v1 }
  0x26   :  { %1292 = vmatpush3.bf16.msra.mxu0 %v1771_v14  ;;  %1310 = vmatpush3.bf16.msra.mxu1 %v1890_v62 }
  0x27   :  { %1293 = vmatprep.subr.bf16.mxu0 %v1656_v1  ;;  %1311 = vmatprep.subr.bf16.mxu1 %v1656_v1 }
  0x2a   :  { %1294 = vmatpush3.bf16.msra.mxu0 %v1778_v15  ;;  %1312 = vmatpush3.bf16.msra.mxu1 %v1896_v63 }
  0x2b   :  { %1295 = vmatprep.subr.bf16.mxu0 %v1656_v1  ;;  %1313 = vmatprep.subr.bf16.mxu1 %v1656_v1 }
  0x2e   :  { %1296 = vmatpush3.bf16.msra.mxu0 %v1785_v16  ;;  %1314 = vmatpush3.bf16.msra.mxu1 %v1902_v0 }
  0x2f   :  { %1297 = vmatprep.subr.bf16.mxu0 %v1656_v1  ;;  %1315 = vmatprep.subr.bf16.mxu1 %v1656_v1 }
  0x32   :  { %1298 = vmatpush3.bf16.msra.mxu0 %v1792_v17  ;;  %1316 = vmatpush3.bf16.msra.mxu1 %v1908_v2 }
  0x33   :  { %1323 = vmatprep.subr.bf16.mxu0 %v1656_v1  ;;  %1317 = vmatprep.subr.bf16.mxu1 %v1656_v1 }
  0x36   :  { %1318 = vmatpush3.bf16.msra.mxu1 %v1914_v3 }
  0x37   :  { %1343 = vmatprep.subr.bf16.mxu1 %v1656_v1 }
  0x94   :  { %v73_v19 = vpop.permute.xlu0 %72  ;;  %v415_v21 = vpop.permute.xlu1 %414 }
  0x95   :  { %v75_v22 = vmul.f32 %v1056_v18, %v73_v19  ;;  %v417_v27 = vmul.f32 %v1056_v18, %v415_v21 }
  0x97   :  { %v76_v23 = vadd.f32 %v1057_v20, %v75_v22  ;;  %v418_v36 = vadd.f32 %v1057_v20, %v417_v27 }
  0x98   :  { %v308_v24 = vpop.permute.xlu0 %307  ;;  %v522_v25 = vpop.permute.xlu1 %521 }
  0x99   :  { %vm78_vm1 = vcmp.ge.f32.partialorder %v76_v23, 1.0  ;;  %v310_v26 = vmul.f32 %v1056_v18, %v308_v24  ;;  %v524_v28 = vmul.f32 %v1056_v18, %v522_v25 }
  0x9a   :  { %vm1069_vm2 = vmpackc.low %vm78_vm1, %vm78_vm1  ;;  %v79_v32 = vsel %vm78_vm1, 0.0, %v76_v23 }
  0x9b   :  { %v311_v29 = vadd.f32 %v1057_v20, %v310_v26  ;;  %1300 = vmatmul.mubr.msk.bf16.vlgmr.msra.gmra.mrb[0].mxu0 %vm1069_vm2, %v1658_v30  ;;  %v525_v31 = vadd.f32 %v1057_v20, %v524_v28 }
  0x9c   :  { %1324 = vmatpush3.bf16.msra.mxu0 %v1728_v6  ;;  %v629_v33 = vpop.permute.xlu0 %628  ;;  %v736_v34 = vpop.permute.xlu1 %735  ;;  %1339 = vmatprep.mubr.msk.bf16.mxu0 %vm1657_vm0, %v1656_v1 }
  0x9d   :  { %v312_v35 = vadd.f32 %v311_v29, %v79_v32  ;;  %v631_v37 = vmul.f32 %v1056_v18, %v629_v33  ;;  %1325 = vmatprep.subr.bf16.mxu0 %v1656_v1  ;;  %v738_v38 = vmul.f32 %v1056_v18, %v736_v34 }
  0x9f   :  { %vm313_vm3 = vcmp.ge.f32.partialorder %v312_v35, 1.0  ;;  %v632_v39 = vadd.f32 %v1057_v20, %v631_v37  ;;  %v739_v40 = vadd.f32 %v1057_v20, %v738_v38 }
  0xa0   :  { %v314_v41 = vsel %vm313_vm3, 0.0, %v312_v35  ;;  %1326 = vmatpush3.bf16.msra.mxu0 %v1740_v9  ;;  %v843_v42 = vpop.permute.xlu0 %842  ;;  %v950_v43 = vpop.permute.xlu1 %949  ;;  %vm1085_vm9 = vmpackc.low %vm313_vm3, %vm313_vm3 }
  0xa1   :  { %v419_v44 = vadd.f32 %v418_v36, %v314_v41  ;;  %v845_v45 = vmul.f32 %v1056_v18, %v843_v42  ;;  %1327 = vmatprep.subr.bf16.mxu0 %v1656_v1  ;;  %v952_v46 = vmul.f32 %v1056_v18, %v950_v43 }
  0xa3   :  { %vm420_vm4 = vcmp.ge.f32.partialorder %v419_v44, 1.0  ;;  %v846_v47 = vadd.f32 %v1057_v20, %v845_v45  ;;  %v953_v48 = vadd.f32 %v1057_v20, %v952_v46 }
  0xa4   :  { %v421_v49 = vsel %vm420_vm4, 0.0, %v419_v44  ;;  %1328 = vmatpush3.bf16.msra.mxu0 %v1757_v12  ;;  %vm1093_vm10 = vmpackc.low %vm420_vm4, %vm420_vm4 }
  0xa5   :  { %v1813_v50 = vadd.f32 %v525_v31, %v421_v49  ;;  %1329 = vmatprep.subr.bf16.mxu0 %v1656_v1 }
  0xa7   :  { %vm527_vm5 = vcmp.ge.f32.partialorder %v1813_v50, 1.0 }
  0xa8   :  { %v528_v51 = vsel %vm527_vm5, 0.0, %v1813_v50  ;;  %1330 = vmatpush3.bf16.msra.mxu0 %v1763_v13  ;;  %vm1101_vm11 = vmpackc.low %vm527_vm5, %vm527_vm5 }
  0xa9   :  { %v1821_v52 = vadd.f32 %v632_v39, %v528_v51  ;;  %1331 = vmatprep.subr.bf16.mxu0 %v1656_v1 }
  0xab   :  { %vm634_vm6 = vcmp.ge.f32.partialorder %v1821_v52, 1.0 }
  0xac   :  { %v635_v53 = vsel %vm634_vm6, 0.0, %v1821_v52  ;;  %1332 = vmatpush3.bf16.msra.mxu0 %v1771_v14  ;;  %vm1109_vm12 = vmpackc.low %vm634_vm6, %vm634_vm6 }
  0xad   :  { %v1829_v54 = vadd.f32 %v739_v40, %v635_v53  ;;  %1333 = vmatprep.subr.bf16.mxu0 %v1656_v1 }
  0xaf   :  { %vm741_vm7 = vcmp.ge.f32.partialorder %v1829_v54, 1.0 }
  0xb0   :  { %v742_v55 = vsel %vm741_vm7, 0.0, %v1829_v54  ;;  %1334 = vmatpush3.bf16.msra.mxu0 %v1778_v15  ;;  %vm1117_vm13 = vmpackc.low %vm741_vm7, %vm741_vm7 }
  0xb1   :  { %v1837_v56 = vadd.f32 %v846_v47, %v742_v55  ;;  %1335 = vmatprep.subr.bf16.mxu0 %v1656_v1 }
  0xb3   :  { %vm848_vm8 = vcmp.ge.f32.partialorder %v1837_v56, 1.0 }
  0xb4   :  { %v849_v57 = vsel %vm848_vm8, 0.0, %v1837_v56  ;;  %1336 = vmatpush3.bf16.msra.mxu0 %v1785_v16  ;;  %vm1125_vm14 = vmpackc.low %vm848_vm8, %vm848_vm8 }
  0xb5   :  { %v1845_v58 = vadd.f32 %v953_v48, %v849_v57  ;;  %1337 = vmatprep.subr.bf16.mxu0 %v1656_v1 }
  0xb7   :  { %vm955_vm2 = vcmp.ge.f32.partialorder %v1845_v58, 1.0 }
  0xb8   :  { %1338 = vmatpush3.bf16.msra.mxu0 %v1792_v17  ;;  %vm1133_vm3 = vmpackc.low %vm955_vm2, %vm955_vm2 }
  0xb9   :  { %1363 = vmatprep.subr.bf16.mxu0 %v1656_v1 }
  0xbb   :  { %1340 = vmatmul.mubr.msk.bf16.vlgmr.msra.gmra.mrb[4].mxu0 %vm1085_vm9, %v1658_v30 }
  0xbc   :  { %1364 = vmatpush3.bf16.msra.mxu0 %v1728_v6  ;;  %1379 = vmatprep.mubr.msk.bf16.mxu0 %vm1657_vm0, %v1656_v1 }
  0xbd   :  { %1365 = vmatprep.subr.bf16.mxu0 %v1656_v1 }
  0xc0   :  { %1366 = vmatpush3.bf16.msra.mxu0 %v1740_v9 }
  0xc1   :  { %1367 = vmatprep.subr.bf16.mxu0 %v1656_v1 }
  0xc4   :  { %1368 = vmatpush3.bf16.msra.mxu0 %v1757_v12 }
  0xc5   :  { %1369 = vmatprep.subr.bf16.mxu0 %v1656_v1 }
  0xc8   :  { %1370 = vmatpush3.bf16.msra.mxu0 %v1763_v13 }
  0xc9   :  { %1371 = vmatprep.subr.bf16.mxu0 %v1656_v1 }
  0xcc   :  { %1372 = vmatpush3.bf16.msra.mxu0 %v1771_v14 }
  0xcd   :  { %1373 = vmatprep.subr.bf16.mxu0 %v1656_v1 }
  0xd0   :  { %1374 = vmatpush3.bf16.msra.mxu0 %v1778_v15 }
  0xd1   :  { %1375 = vmatprep.subr.bf16.mxu0 %v1656_v1 }
  0xd4   :  { %1376 = vmatpush3.bf16.msra.mxu0 %v1785_v16 }
  0xd5   :  { %1377 = vmatprep.subr.bf16.mxu0 %v1656_v1 }
  0xd8   :  { %1378 = vmatpush3.bf16.msra.mxu0 %v1792_v17 }
  0xd9   :  { %1403 = vmatprep.subr.bf16.mxu0 %v1656_v1 }
  0xdb   :  { %1380 = vmatmul.mubr.msk.bf16.vlgmr.msra.gmra.mrb[8].mxu0 %vm1093_vm10, %v1658_v30 }
  0xdc   :  { %1404 = vmatpush3.bf16.msra.mxu0 %v1728_v6  ;;  %1419 = vmatprep.mubr.msk.bf16.mxu0 %vm1657_vm0, %v1656_v1 }
  0xdd   :  { %1405 = vmatprep.subr.bf16.mxu0 %v1656_v1 }
  0xe0   :  { %1406 = vmatpush3.bf16.msra.mxu0 %v1740_v9 }
  0xe1   :  { %1407 = vmatprep.subr.bf16.mxu0 %v1656_v1 }
  0xe4   :  { %1408 = vmatpush3.bf16.msra.mxu0 %v1757_v12 }
  0xe5   :  { %1409 = vmatprep.subr.bf16.mxu0 %v1656_v1 }
  0xe8   :  { %1410 = vmatpush3.bf16.msra.mxu0 %v1763_v13 }
  0xe9   :  { %1411 = vmatprep.subr.bf16.mxu0 %v1656_v1 }
  0xec   :  { %1412 = vmatpush3.bf16.msra.mxu0 %v1771_v14 }
  0xed   :  { %1413 = vmatprep.subr.bf16.mxu0 %v1656_v1 }
  0xf0   :  { %1414 = vmatpush3.bf16.msra.mxu0 %v1778_v15 }
  0xf1   :  { %1415 = vmatprep.subr.bf16.mxu0 %v1656_v1 }
  0xf4   :  { %1416 = vmatpush3.bf16.msra.mxu0 %v1785_v16 }
  0xf5   :  { %1417 = vmatprep.subr.bf16.mxu0 %v1656_v1 }
  0xf8   :  { %1418 = vmatpush3.bf16.msra.mxu0 %v1792_v17 }
  0xf9   :  { %1443 = vmatprep.subr.bf16.mxu0 %v1656_v1 }
  0xfb   :  { %1420 = vmatmul.mubr.msk.bf16.vlgmr.msra.gmra.mrb[12].mxu0 %vm1101_vm11, %v1658_v30 }
  0xfc   :  { %1444 = vmatpush3.bf16.msra.mxu0 %v1728_v6  ;;  %1459 = vmatprep.mubr.msk.bf16.mxu0 %vm1657_vm0, %v1656_v1 }
  0xfd   :  { %1445 = vmatprep.subr.bf16.mxu0 %v1656_v1 }
 0x100   :  { %1446 = vmatpush3.bf16.msra.mxu0 %v1740_v9 }
 0x101   :  { %1447 = vmatprep.subr.bf16.mxu0 %v1656_v1 }
 0x104   :  { %1448 = vmatpush3.bf16.msra.mxu0 %v1757_v12 }
 0x105   :  { %1449 = vmatprep.subr.bf16.mxu0 %v1656_v1 }
 0x108   :  { %1450 = vmatpush3.bf16.msra.mxu0 %v1763_v13 }
 0x109   :  { %1451 = vmatprep.subr.bf16.mxu0 %v1656_v1 }
 0x10c   :  { %1452 = vmatpush3.bf16.msra.mxu0 %v1771_v14 }
 0x10d   :  { %1453 = vmatprep.subr.bf16.mxu0 %v1656_v1 }
 0x110   :  { %1454 = vmatpush3.bf16.msra.mxu0 %v1778_v15 }
 0x111   :  { %1455 = vmatprep.subr.bf16.mxu0 %v1656_v1 }
 0x114   :  { %1456 = vmatpush3.bf16.msra.mxu0 %v1785_v16 }
 0x115   :  { %1457 = vmatprep.subr.bf16.mxu0 %v1656_v1 }
 0x118   :  { %1458 = vmatpush3.bf16.msra.mxu0 %v1792_v17 }
 0x119   :  { %1483 = vmatprep.subr.bf16.mxu0 %v1656_v1 }
 0x11b   :  { %1460 = vmatmul.mubr.msk.bf16.vlgmr.msra.gmra.mrb[16].mxu0 %vm1109_vm12, %v1658_v30 }
 0x11c   :  { %1484 = vmatpush3.bf16.msra.mxu0 %v1728_v6  ;;  %1499 = vmatprep.mubr.msk.bf16.mxu0 %vm1657_vm0, %v1656_v1 }
 0x11d   :  { %1485 = vmatprep.subr.bf16.mxu0 %v1656_v1 }
 0x120   :  { %1486 = vmatpush3.bf16.msra.mxu0 %v1740_v9 }
 0x121   :  { %1487 = vmatprep.subr.bf16.mxu0 %v1656_v1 }
 0x124   :  { %1488 = vmatpush3.bf16.msra.mxu0 %v1757_v12 }
 0x125   :  { %1489 = vmatprep.subr.bf16.mxu0 %v1656_v1 }
 0x128   :  { %1490 = vmatpush3.bf16.msra.mxu0 %v1763_v13 }
 0x129   :  { %1491 = vmatprep.subr.bf16.mxu0 %v1656_v1 }
 0x12c   :  { %1492 = vmatpush3.bf16.msra.mxu0 %v1771_v14 }
 0x12d   :  { %1493 = vmatprep.subr.bf16.mxu0 %v1656_v1 }
 0x130   :  { %1494 = vmatpush3.bf16.msra.mxu0 %v1778_v15 }
 0x131   :  { %1495 = vmatprep.subr.bf16.mxu0 %v1656_v1 }
 0x134   :  { %1496 = vmatpush3.bf16.msra.mxu0 %v1785_v16 }
 0x135   :  { %1497 = vmatprep.subr.bf16.mxu0 %v1656_v1 }
 0x138   :  { %1498 = vmatpush3.bf16.msra.mxu0 %v1792_v17 }
 0x139   :  { %1523 = vmatprep.subr.bf16.mxu0 %v1656_v1 }
 0x13b   :  { %1500 = vmatmul.mubr.msk.bf16.vlgmr.msra.gmra.mrb[20].mxu0 %vm1117_vm13, %v1658_v30 }
 0x13c   :  { %1524 = vmatpush3.bf16.msra.mxu0 %v1728_v6  ;;  %1539 = vmatprep.mubr.msk.bf16.mxu0 %vm1657_vm0, %v1656_v1 }
 0x13d   :  { %1525 = vmatprep.subr.bf16.mxu0 %v1656_v1 }
 0x140   :  { %1526 = vmatpush3.bf16.msra.mxu0 %v1740_v9 }
 0x141   :  { %1527 = vmatprep.subr.bf16.mxu0 %v1656_v1 }
 0x144   :  { %1528 = vmatpush3.bf16.msra.mxu0 %v1757_v12 }
 0x145   :  { %1529 = vmatprep.subr.bf16.mxu0 %v1656_v1 }
 0x148   :  { %1530 = vmatpush3.bf16.msra.mxu0 %v1763_v13 }
 0x149   :  { %1531 = vmatprep.subr.bf16.mxu0 %v1656_v1 }
 0x14c   :  { %1532 = vmatpush3.bf16.msra.mxu0 %v1771_v14 }
 0x14d   :  { %1533 = vmatprep.subr.bf16.mxu0 %v1656_v1 }
 0x150   :  { %1534 = vmatpush3.bf16.msra.mxu0 %v1778_v15 }
 0x151   :  { %1535 = vmatprep.subr.bf16.mxu0 %v1656_v1 }
 0x154   :  { %1536 = vmatpush3.bf16.msra.mxu0 %v1785_v16 }
 0x155   :  { %1537 = vmatprep.subr.bf16.mxu0 %v1656_v1 }
 0x158   :  { %1538 = vmatpush3.bf16.msra.mxu0 %v1792_v17 }
 0x159   :  { %1563 = vmatprep.subr.bf16.mxu0 %v1656_v1 }
 0x15b   :  { %1540 = vmatmul.mubr.msk.bf16.vlgmr.msra.gmra.mrb[24].mxu0 %vm1125_vm14, %v1658_v30 }
 0x15c   :  { %1564 = vmatpush3.bf16.msra.mxu0 %v1728_v6  ;;  %1579 = vmatprep.mubr.msk.bf16.mxu0 %vm1657_vm0, %v1656_v1 }
 0x15d   :  { %1565 = vmatprep.subr.bf16.mxu0 %v1656_v1 }
 0x160   :  { %1566 = vmatpush3.bf16.msra.mxu0 %v1740_v9 }
 0x161   :  { %1567 = vmatprep.subr.bf16.mxu0 %v1656_v1 }
 0x164   :  { %1568 = vmatpush3.bf16.msra.mxu0 %v1757_v12 }
 0x165   :  { %1569 = vmatprep.subr.bf16.mxu0 %v1656_v1 }
 0x168   :  { %1570 = vmatpush3.bf16.msra.mxu0 %v1763_v13 }
 0x169   :  { %1571 = vmatprep.subr.bf16.mxu0 %v1656_v1 }
 0x16c   :  { %1572 = vmatpush3.bf16.msra.mxu0 %v1771_v14 }
 0x16d   :  { %1573 = vmatprep.subr.bf16.mxu0 %v1656_v1 }
 0x16e   :  { %v181_v5 = vpop.f32.mrb[0].mxu0 }
 0x16f   :  { %v182_v6 = vadd.f32 %v2008_v4, %v181_v5  ;;  %v1301_v7 = vpop.f32.mrb[1].mxu0 }
 0x170   :  { %1574 = vmatpush3.bf16.msra.mxu0 %v1778_v15  ;;  %v184_v8 = vpop.f32.mrb[2].mxu0 }
 0x171   :  { %vm188_vm15 = vcmp.ge.f32.partialorder %v182_v6, 1.0  ;;  %v1302_v9 = vpop.f32.mrb[3].mxu0  ;;  %1575 = vmatprep.subr.bf16.mxu0 %v1656_v1 }
 0x172   :  { %vm1080_vm1 = vmpackc.low %vm188_vm15, %vm188_vm15  ;;  %v189_v13 = vsel %vm188_vm15, 0.0, %v182_v6 }
 0x173   :  { %1320 = vmatmul.mubr.msk.bf16.vlgmr.msra.gmra.mrb[0].mxu1 %vm1080_vm1, %v1658_v30 }
 0x174   :  { %1576 = vmatpush3.bf16.msra.mxu0 %v1785_v16  ;;  %1344 = vmatpush3.bf16.msra.mxu1 %v1867_v59 }
 0x175   :  { %1577 = vmatprep.subr.bf16.mxu0 %v1656_v1  ;;  %1345 = vmatprep.subr.bf16.mxu1 %v1656_v1 }
 0x176   :  { %1359 = vmatprep.mubr.msk.bf16.mxu1 %vm1657_vm0, %v1656_v1 }
 0x178   :  { %1578 = vmatpush3.bf16.msra.mxu0 %v1792_v17  ;;  %1346 = vmatpush3.bf16.msra.mxu1 %v1873_v60 }
 0x179   :  { %1347 = vmatprep.subr.bf16.mxu1 %v1656_v1 }
 0x17b   :  { %1580 = vmatmul.mubr.msk.bf16.vlgmr.msra.gmra.mrb[28].mxu0 %vm1133_vm3, %v1658_v30 }
 0x17c   :  { %1348 = vmatpush3.bf16.msra.mxu1 %v1882_v61 }
 0x17d   :  { %1349 = vmatprep.subr.bf16.mxu1 %v1656_v1 }
 0x180   :  { %1350 = vmatpush3.bf16.msra.mxu1 %v1890_v62 }
 0x181   :  { %1351 = vmatprep.subr.bf16.mxu1 %v1656_v1 }
 0x184   :  { %1352 = vmatpush3.bf16.msra.mxu1 %v1896_v63 }
 0x185   :  { %1353 = vmatprep.subr.bf16.mxu1 %v1656_v1 }
 0x188   :  { %1354 = vmatpush3.bf16.msra.mxu1 %v1902_v0 }
 0x189   :  { %1355 = vmatprep.subr.bf16.mxu1 %v1656_v1 }
 0x18c   :  { %1356 = vmatpush3.bf16.msra.mxu1 %v1908_v2 }
 0x18d   :  { %1357 = vmatprep.subr.bf16.mxu1 %v1656_v1 }
 0x18e   :  { %v352_v10 = vpop.f32.mrb[4].mxu0 }
 0x18f   :  { %v353_v11 = vadd.f32 %v2008_v4, %v352_v10  ;;  %v1341_v12 = vpop.f32.mrb[5].mxu0 }
 0x190   :  { %v355_v14 = vpop.f32.mrb[6].mxu0  ;;  %1358 = vmatpush3.bf16.msra.mxu1 %v1914_v3 }
 0x191   :  { %v358_v15 = vadd.f32 %v353_v11, %v189_v13  ;;  %v1342_v16 = vpop.f32.mrb[7].mxu0  ;;  %1383 = vmatprep.subr.bf16.mxu1 %v1656_v1 }
 0x193   :  { %vm359_vm4 = vcmp.ge.f32.partialorder %v358_v15, 1.0 }
 0x194   :  { %vm1088_vm5 = vmpackc.low %vm359_vm4, %vm359_vm4  ;;  %v360_v20 = vsel %vm359_vm4, 0.0, %v358_v15 }
 0x195   :  { %1360 = vmatmul.mubr.msk.bf16.vlgmr.msra.gmra.mrb[4].mxu1 %vm1088_vm5, %v1658_v30 }
 0x196   :  { %1384 = vmatpush3.bf16.msra.mxu1 %v1867_v59  ;;  %1399 = vmatprep.mubr.msk.bf16.mxu1 %vm1657_vm0, %v1656_v1 }
 0x197   :  { %1385 = vmatprep.subr.bf16.mxu1 %v1656_v1 }
 0x19a   :  { %1386 = vmatpush3.bf16.msra.mxu1 %v1873_v60 }
 0x19b   :  { %1387 = vmatprep.subr.bf16.mxu1 %v1656_v1 }
 0x19e   :  { %1388 = vmatpush3.bf16.msra.mxu1 %v1882_v61 }
 0x19f   :  { %1389 = vmatprep.subr.bf16.mxu1 %v1656_v1 }
 0x1a2   :  { %1390 = vmatpush3.bf16.msra.mxu1 %v1890_v62 }
 0x1a3   :  { %1391 = vmatprep.subr.bf16.mxu1 %v1656_v1 }
 0x1a6   :  { %1392 = vmatpush3.bf16.msra.mxu1 %v1896_v63 }
 0x1a7   :  { %1393 = vmatprep.subr.bf16.mxu1 %v1656_v1 }
 0x1aa   :  { %1394 = vmatpush3.bf16.msra.mxu1 %v1902_v0 }
 0x1ab   :  { %1395 = vmatprep.subr.bf16.mxu1 %v1656_v1 }
 0x1ae   :  { %v459_v17 = vpop.f32.mrb[8].mxu0  ;;  %1396 = vmatpush3.bf16.msra.mxu1 %v1908_v2 }
 0x1af   :  { %v460_v18 = vadd.f32 %v2008_v4, %v459_v17  ;;  %v1381_v19 = vpop.f32.mrb[9].mxu0  ;;  %1397 = vmatprep.subr.bf16.mxu1 %v1656_v1 }
 0x1b0   :  { %v462_v21 = vpop.f32.mrb[10].mxu0 }
 0x1b1   :  { %v465_v22 = vadd.f32 %v460_v18, %v360_v20  ;;  %v1382_v23 = vpop.f32.mrb[11].mxu0 }
 0x1b2   :  { %1398 = vmatpush3.bf16.msra.mxu1 %v1914_v3 }
 0x1b3   :  { %vm466_vm6 = vcmp.ge.f32.partialorder %v465_v22, 1.0  ;;  %1423 = vmatprep.subr.bf16.mxu1 %v1656_v1 }
 0x1b4   :  { %vm1096_vm7 = vmpackc.low %vm466_vm6, %vm466_vm6  ;;  %v467_v27 = vsel %vm466_vm6, 0.0, %v465_v22 }
 0x1b5   :  { %1400 = vmatmul.mubr.msk.bf16.vlgmr.msra.gmra.mrb[8].mxu1 %vm1096_vm7, %v1658_v30 }
 0x1b6   :  { %1424 = vmatpush3.bf16.msra.mxu1 %v1867_v59  ;;  %1439 = vmatprep.mubr.msk.bf16.mxu1 %vm1657_vm0, %v1656_v1 }
 0x1b7   :  { %1425 = vmatprep.subr.bf16.mxu1 %v1656_v1 }
 0x1ba   :  { %1426 = vmatpush3.bf16.msra.mxu1 %v1873_v60 }
 0x1bb   :  { %1427 = vmatprep.subr.bf16.mxu1 %v1656_v1 }
 0x1be   :  { %1428 = vmatpush3.bf16.msra.mxu1 %v1882_v61 }
 0x1bf   :  { %1429 = vmatprep.subr.bf16.mxu1 %v1656_v1 }
 0x1c2   :  { %1430 = vmatpush3.bf16.msra.mxu1 %v1890_v62 }
 0x1c3   :  { %1431 = vmatprep.subr.bf16.mxu1 %v1656_v1 }
 0x1c6   :  { %1432 = vmatpush3.bf16.msra.mxu1 %v1896_v63 }
 0x1c7   :  { %1433 = vmatprep.subr.bf16.mxu1 %v1656_v1 }
 0x1ca   :  { %1434 = vmatpush3.bf16.msra.mxu1 %v1902_v0 }
 0x1cb   :  { %1435 = vmatprep.subr.bf16.mxu1 %v1656_v1 }
 0x1ce   :  { %v566_v24 = vpop.f32.mrb[12].mxu0  ;;  %1436 = vmatpush3.bf16.msra.mxu1 %v1908_v2 }
 0x1cf   :  { %v567_v25 = vadd.f32 %v2008_v4, %v566_v24  ;;  %v1421_v26 = vpop.f32.mrb[13].mxu0  ;;  %1437 = vmatprep.subr.bf16.mxu1 %v1656_v1 }
 0x1d0   :  { %v569_v28 = vpop.f32.mrb[14].mxu0 }
 0x1d1   :  { %v572_v29 = vadd.f32 %v567_v25, %v467_v27  ;;  %v1422_v31 = vpop.f32.mrb[15].mxu0 }
 0x1d2   :  { %1438 = vmatpush3.bf16.msra.mxu1 %v1914_v3 }
 0x1d3   :  { %vm573_vm8 = vcmp.ge.f32.partialorder %v572_v29, 1.0  ;;  %1463 = vmatprep.subr.bf16.mxu1 %v1656_v1 }
 0x1d4   :  { %vm1104_vm9 = vmpackc.low %vm573_vm8, %vm573_vm8  ;;  %v574_v35 = vsel %vm573_vm8, 0.0, %v572_v29 }
 0x1d5   :  { %1440 = vmatmul.mubr.msk.bf16.vlgmr.msra.gmra.mrb[12].mxu1 %vm1104_vm9, %v1658_v30 }
 0x1d6   :  { %1464 = vmatpush3.bf16.msra.mxu1 %v1867_v59  ;;  %1479 = vmatprep.mubr.msk.bf16.mxu1 %vm1657_vm0, %v1656_v1 }
 0x1d7   :  { %1465 = vmatprep.subr.bf16.mxu1 %v1656_v1 }
 0x1da   :  { %1466 = vmatpush3.bf16.msra.mxu1 %v1873_v60 }
 0x1db   :  { %1467 = vmatprep.subr.bf16.mxu1 %v1656_v1 }
 0x1de   :  { %1468 = vmatpush3.bf16.msra.mxu1 %v1882_v61 }
 0x1df   :  { %1469 = vmatprep.subr.bf16.mxu1 %v1656_v1 }
 0x1e2   :  { %1470 = vmatpush3.bf16.msra.mxu1 %v1890_v62 }
 0x1e3   :  { %1471 = vmatprep.subr.bf16.mxu1 %v1656_v1 }
 0x1e6   :  { %1472 = vmatpush3.bf16.msra.mxu1 %v1896_v63 }
 0x1e7   :  { %1473 = vmatprep.subr.bf16.mxu1 %v1656_v1 }
 0x1ea   :  { %1474 = vmatpush3.bf16.msra.mxu1 %v1902_v0 }
 0x1eb   :  { %1475 = vmatprep.subr.bf16.mxu1 %v1656_v1 }
 0x1ee   :  { %v673_v32 = vpop.f32.mrb[16].mxu0  ;;  %1476 = vmatpush3.bf16.msra.mxu1 %v1908_v2 }
 0x1ef   :  { %v674_v33 = vadd.f32 %v2008_v4, %v673_v32  ;;  %v1461_v34 = vpop.f32.mrb[17].mxu0  ;;  %1477 = vmatprep.subr.bf16.mxu1 %v1656_v1 }
 0x1f0   :  { %v676_v36 = vpop.f32.mrb[18].mxu0 }
 0x1f1   :  { %v679_v37 = vadd.f32 %v674_v33, %v574_v35  ;;  %v1462_v38 = vpop.f32.mrb[19].mxu0 }
 0x1f2   :  { %1478 = vmatpush3.bf16.msra.mxu1 %v1914_v3 }
 0x1f3   :  { %vm680_vm10 = vcmp.ge.f32.partialorder %v679_v37, 1.0  ;;  %1503 = vmatprep.subr.bf16.mxu1 %v1656_v1 }
 0x1f4   :  { %vm1112_vm11 = vmpackc.low %vm680_vm10, %vm680_vm10  ;;  %v681_v42 = vsel %vm680_vm10, 0.0, %v679_v37 }
 0x1f5   :  { %1480 = vmatmul.mubr.msk.bf16.vlgmr.msra.gmra.mrb[16].mxu1 %vm1112_vm11, %v1658_v30 }
 0x1f6   :  { %1504 = vmatpush3.bf16.msra.mxu1 %v1867_v59  ;;  %1519 = vmatprep.mubr.msk.bf16.mxu1 %vm1657_vm0, %v1656_v1 }
 0x1f7   :  { %1505 = vmatprep.subr.bf16.mxu1 %v1656_v1 }
 0x1fa   :  { %1506 = vmatpush3.bf16.msra.mxu1 %v1873_v60 }
 0x1fb   :  { %1507 = vmatprep.subr.bf16.mxu1 %v1656_v1 }
 0x1fe   :  { %1508 = vmatpush3.bf16.msra.mxu1 %v1882_v61 }
 0x1ff   :  { %1509 = vmatprep.subr.bf16.mxu1 %v1656_v1 }
 0x202   :  { %1510 = vmatpush3.bf16.msra.mxu1 %v1890_v62 }
 0x203   :  { %1511 = vmatprep.subr.bf16.mxu1 %v1656_v1 }
 0x206   :  { %1512 = vmatpush3.bf16.msra.mxu1 %v1896_v63 }
 0x207   :  { %1513 = vmatprep.subr.bf16.mxu1 %v1656_v1 }
 0x20a   :  { %1514 = vmatpush3.bf16.msra.mxu1 %v1902_v0 }
 0x20b   :  { %1515 = vmatprep.subr.bf16.mxu1 %v1656_v1 }
 0x20e   :  { %v780_v39 = vpop.f32.mrb[20].mxu0  ;;  %1516 = vmatpush3.bf16.msra.mxu1 %v1908_v2 }
 0x20f   :  { %v781_v40 = vadd.f32 %v2008_v4, %v780_v39  ;;  %v1501_v41 = vpop.f32.mrb[21].mxu0  ;;  %1517 = vmatprep.subr.bf16.mxu1 %v1656_v1 }
 0x210   :  { %v783_v43 = vpop.f32.mrb[22].mxu0 }
 0x211   :  { %v786_v44 = vadd.f32 %v781_v40, %v681_v42  ;;  %v1502_v45 = vpop.f32.mrb[23].mxu0 }
 0x212   :  { %1518 = vmatpush3.bf16.msra.mxu1 %v1914_v3 }
 0x213   :  { %vm787_vm12 = vcmp.ge.f32.partialorder %v786_v44, 1.0  ;;  %1543 = vmatprep.subr.bf16.mxu1 %v1656_v1 }
 0x214   :  { %vm1120_vm13 = vmpackc.low %vm787_vm12, %vm787_vm12  ;;  %v788_v49 = vsel %vm787_vm12, 0.0, %v786_v44 }
 0x215   :  { %1520 = vmatmul.mubr.msk.bf16.vlgmr.msra.gmra.mrb[20].mxu1 %vm1120_vm13, %v1658_v30 }
 0x216   :  { %1544 = vmatpush3.bf16.msra.mxu1 %v1867_v59  ;;  %1559 = vmatprep.mubr.msk.bf16.mxu1 %vm1657_vm0, %v1656_v1 }
 0x217   :  { %1545 = vmatprep.subr.bf16.mxu1 %v1656_v1 }
 0x21a   :  { %1546 = vmatpush3.bf16.msra.mxu1 %v1873_v60 }
 0x21b   :  { %1547 = vmatprep.subr.bf16.mxu1 %v1656_v1 }
 0x21e   :  { %1548 = vmatpush3.bf16.msra.mxu1 %v1882_v61 }
 0x21f   :  { %1549 = vmatprep.subr.bf16.mxu1 %v1656_v1 }
 0x222   :  { %1550 = vmatpush3.bf16.msra.mxu1 %v1890_v62 }
 0x223   :  { %1551 = vmatprep.subr.bf16.mxu1 %v1656_v1 }
 0x226   :  { %1552 = vmatpush3.bf16.msra.mxu1 %v1896_v63 }
 0x227   :  { %1553 = vmatprep.subr.bf16.mxu1 %v1656_v1 }
 0x22a   :  { %1554 = vmatpush3.bf16.msra.mxu1 %v1902_v0 }
 0x22b   :  { %1555 = vmatprep.subr.bf16.mxu1 %v1656_v1 }
 0x22e   :  { %v887_v46 = vpop.f32.mrb[24].mxu0  ;;  %1556 = vmatpush3.bf16.msra.mxu1 %v1908_v2 }
 0x22f   :  { %v888_v47 = vadd.f32 %v2008_v4, %v887_v46  ;;  %v1541_v48 = vpop.f32.mrb[25].mxu0  ;;  %1557 = vmatprep.subr.bf16.mxu1 %v1656_v1 }
 0x230   :  { %v890_v50 = vpop.f32.mrb[26].mxu0 }
 0x231   :  { %v893_v51 = vadd.f32 %v888_v47, %v788_v49  ;;  %v1542_v52 = vpop.f32.mrb[27].mxu0 }
 0x232   :  { %1558 = vmatpush3.bf16.msra.mxu1 %v1914_v3 }
 0x233   :  { %vm894_vm14 = vcmp.ge.f32.partialorder %v893_v51, 1.0  ;;  %1583 = vmatprep.subr.bf16.mxu1 %v1656_v1 }
 0x234   :  { %vm1128_vm15 = vmpackc.low %vm894_vm14, %vm894_vm14 }
 0x235   :  { %1560 = vmatmul.mubr.msk.bf16.vlgmr.msra.gmra.mrb[24].mxu1 %vm1128_vm15, %v1658_v30 }
 0x236   :  { %1584 = vmatpush3.bf16.msra.mxu1 %v1867_v59  ;;  %1599 = vmatprep.mubr.msk.bf16.mxu1 %vm1657_vm0, %v1656_v1 }
 0x237   :  { %1585 = vmatprep.subr.bf16.mxu1 %v1656_v1 }
 0x23a   :  { %1586 = vmatpush3.bf16.msra.mxu1 %v1873_v60  ;;  %v895_v60 = vsel %vm894_vm14, 0.0, %v893_v51 }
 0x23b   :  { %1587 = vmatprep.subr.bf16.mxu1 %v1656_v1 }
 0x23e   :  { %1588 = vmatpush3.bf16.msra.mxu1 %v1882_v61 }
 0x23f   :  { %1589 = vmatprep.subr.bf16.mxu1 %v1656_v1 }
 0x242   :  { %1590 = vmatpush3.bf16.msra.mxu1 %v1890_v62 }
 0x243   :  { %1591 = vmatprep.subr.bf16.mxu1 %v1656_v1 }
 0x246   :  { %1592 = vmatpush3.bf16.msra.mxu1 %v1896_v63  ;;  %v291_v53 = vpop.f32.mrb[0].mxu1 }
 0x247   :  { %v1321_v54 = vpop.f32.mrb[1].mxu1  ;;  %1593 = vmatprep.subr.bf16.mxu1 %v1656_v1 }
 0x248   :  { %v294_v55 = vpop.f32.mrb[2].mxu1 }
 0x249   :  { %v1322_v56 = vpop.f32.mrb[3].mxu1 }
 0x24a   :  { %1594 = vmatpush3.bf16.msra.mxu1 %v1902_v0  ;;  %v2183_v0 = vld [vmem:[%s2210_s6] ss:$0 sm:$0xff] }
 0x24b   :  { %1595 = vmatprep.subr.bf16.mxu1 %v1656_v1 }
 0x24e   :  { %v993_v57 = vpop.f32.mrb[28].mxu0  ;;  %1596 = vmatpush3.bf16.msra.mxu1 %v1908_v2  ;;  %v292_v2 = vadd.f32 %v2183_v0, %v291_v53 }
 0x24f   :  { %v994_v58 = vadd.f32 %v2008_v4, %v993_v57  ;;  %v1581_v59 = vpop.f32.mrb[29].mxu0  ;;  %1597 = vmatprep.subr.bf16.mxu1 %v1656_v1 }
 0x250   :  { %v996_v61 = vpop.f32.mrb[30].mxu0  ;;  %vm298_vm2 = vcmp.ge.f32.partialorder %v292_v2, 1.0 }
 0x251   :  { %v999_v62 = vadd.f32 %v994_v58, %v895_v60  ;;  %v1582_v63 = vpop.f32.mrb[31].mxu0  ;;  %v301_v7 = vsel %vm298_vm2, 0.0, %v292_v2  ;;  %v1082_v10 = vsel %vm298_vm2, 1.0, %v1656_v1 }
 0x252   :  { %1598 = vmatpush3.bf16.msra.mxu1 %v1914_v3 }
 0x253   :  { %vm1000_vm0 = vcmp.ge.f32.partialorder %v999_v62, 1.0 }
 0x254   :  { %vm1136_vm1 = vmpackc.low %vm1000_vm0, %vm1000_vm0 }
 0x255   :  { %1600 = vmatmul.mubr.msk.bf16.vlgmr.msra.gmra.mrb[28].mxu1 %vm1136_vm1, %v1658_v30 }
 0x268   :  { %v398_v4 = vpop.f32.mrb[4].mxu1 }
 0x269   :  { %v399_v5 = vadd.f32 %v2183_v0, %v398_v4  ;;  %v1361_v6 = vpop.f32.mrb[5].mxu1 }
 0x26a   :  { %v401_v8 = vpop.f32.mrb[6].mxu1 }
 0x26b   :  { %v404_v9 = vadd.f32 %v399_v5, %v301_v7  ;;  %v1362_v3 = vpop.f32.mrb[7].mxu1 }
 0x26d   :  { %vm405_vm3 = vcmp.ge.f32.partialorder %v404_v9, 1.0 }
 0x26e   :  { %v1090_v30 = vsel %vm405_vm3, 1.0, %v1656_v1  ;;  %v408_v15 = vsel %vm405_vm3, 0.0, %v404_v9 }
 0x26f   :  { %v409_v11 = vadd.f32 %v1090_v30, %v1082_v10 }
 0x288   :  { %v505_v12 = vpop.f32.mrb[8].mxu1 }
 0x289   :  { %v506_v13 = vadd.f32 %v2183_v0, %v505_v12  ;;  %v1401_v14 = vpop.f32.mrb[9].mxu1 }
 0x28a   :  { %v508_v16 = vpop.f32.mrb[10].mxu1 }
 0x28b   :  { %v511_v17 = vadd.f32 %v506_v13, %v408_v15  ;;  %v1402_v18 = vpop.f32.mrb[11].mxu1 }
 0x28d   :  { %vm512_vm4 = vcmp.ge.f32.partialorder %v511_v17, 1.0 }
 0x28e   :  { %v1098_v19 = vsel %vm512_vm4, 1.0, %v1656_v1  ;;  %v515_v24 = vsel %vm512_vm4, 0.0, %v511_v17 }
 0x28f   :  { %v516_v20 = vadd.f32 %v1098_v19, %v409_v11 }
 0x2a8   :  { %v612_v21 = vpop.f32.mrb[12].mxu1 }
 0x2a9   :  { %v613_v22 = vadd.f32 %v2183_v0, %v612_v21  ;;  %v1441_v23 = vpop.f32.mrb[13].mxu1 }
 0x2aa   :  { %v615_v25 = vpop.f32.mrb[14].mxu1 }
 0x2ab   :  { %v618_v26 = vadd.f32 %v613_v22, %v515_v24  ;;  %v1442_v27 = vpop.f32.mrb[15].mxu1 }
 0x2ad   :  { %vm619_vm5 = vcmp.ge.f32.partialorder %v618_v26, 1.0 }
 0x2ae   :  { %v1106_v28 = vsel %vm619_vm5, 1.0, %v1656_v1  ;;  %v622_v34 = vsel %vm619_vm5, 0.0, %v618_v26 }
 0x2af   :  { %v623_v29 = vadd.f32 %v1106_v28, %v516_v20 }
 0x2c8   :  { %v719_v31 = vpop.f32.mrb[16].mxu1 }
 0x2c9   :  { %v720_v32 = vadd.f32 %v2183_v0, %v719_v31  ;;  %v1481_v33 = vpop.f32.mrb[17].mxu1 }
 0x2ca   :  { %v722_v35 = vpop.f32.mrb[18].mxu1 }
 0x2cb   :  { %v725_v36 = vadd.f32 %v720_v32, %v622_v34  ;;  %v1482_v37 = vpop.f32.mrb[19].mxu1 }
 0x2cd   :  { %vm726_vm6 = vcmp.ge.f32.partialorder %v725_v36, 1.0 }
 0x2ce   :  { %v1114_v38 = vsel %vm726_vm6, 1.0, %v1656_v1  ;;  %v729_v43 = vsel %vm726_vm6, 0.0, %v725_v36 }
 0x2cf   :  { %v730_v39 = vadd.f32 %v1114_v38, %v623_v29 }
 0x2e8   :  { %v826_v40 = vpop.f32.mrb[20].mxu1 }
 0x2e9   :  { %v827_v41 = vadd.f32 %v2183_v0, %v826_v40  ;;  %v1521_v42 = vpop.f32.mrb[21].mxu1 }
 0x2ea   :  { %v829_v44 = vpop.f32.mrb[22].mxu1 }
 0x2eb   :  { %v832_v45 = vadd.f32 %v827_v41, %v729_v43  ;;  %v1522_v46 = vpop.f32.mrb[23].mxu1 }
 0x2ed   :  { %vm833_vm7 = vcmp.ge.f32.partialorder %v832_v45, 1.0 }
 0x2ee   :  { %v1122_v47 = vsel %vm833_vm7, 1.0, %v1656_v1  ;;  %v836_v52 = vsel %vm833_vm7, 0.0, %v832_v45 }
 0x2ef   :  { %v837_v48 = vadd.f32 %v1122_v47, %v730_v39 }
 0x308   :  { %v933_v49 = vpop.f32.mrb[24].mxu1 }
 0x309   :  { %v934_v50 = vadd.f32 %v2183_v0, %v933_v49  ;;  %v1561_v51 = vpop.f32.mrb[25].mxu1 }
 0x30a   :  { %v936_v53 = vpop.f32.mrb[26].mxu1 }
 0x30b   :  { %v939_v54 = vadd.f32 %v934_v50, %v836_v52  ;;  %v1562_v55 = vpop.f32.mrb[27].mxu1 }
 0x30d   :  { %vm940_vm8 = vcmp.ge.f32.partialorder %v939_v54, 1.0 }
 0x30e   :  { %v1130_v56 = vsel %vm940_vm8, 1.0, %v1656_v1  ;;  %v943_v61 = vsel %vm940_vm8, 0.0, %v939_v54 }
 0x30f   :  { %v944_v57 = vadd.f32 %v1130_v56, %v837_v48 }
 0x328   :  { %v1038_v58 = vpop.f32.mrb[28].mxu1 }
 0x329   :  { %v1039_v59 = vadd.f32 %v2183_v0, %v1038_v58  ;;  %v1601_v60 = vpop.f32.mrb[29].mxu1 }
 0x32a   :  { %v1041_v62 = vpop.f32.mrb[30].mxu1 }
 0x32b   :  { %v1044_v63 = vadd.f32 %v1039_v59, %v943_v61  ;;  %v1602_v2 = vpop.f32.mrb[31].mxu1 }
 0x32d   :  { %vm1045_vm9 = vcmp.ge.f32.partialorder %v1044_v63, 1.0 }
 0x32e   :  { %v1138_v4 = vsel %vm1045_vm9, 1.0, %v1656_v1 }
 0x32f   :  { %v1048_v5 = vadd.f32 %v1138_v4, %v944_v57 }
 0x331   :  { %v1049_v6 = vmul.f32 0.125, %v1048_v5 }
 0x333   :  { %1050 = vst [vmem:[%s2211_s7] sm:$0xff] %v1049_v6 }
 0x334   :  { %1055 = vsyncpa [#allocation3], 1 }

</bundles_post_ra>
